<compile_context>
chip_gen: v5e
topology: v5e:2x2
jax: 0.10.0
libtpu: 0.0.40
codegen_flags: <defaults>
</compile_context>

<pallas_src>
import math
import numpy as np
import jax
import jax.numpy as jnp
from jax.experimental import pallas as pl
from jax.experimental.pallas import tpu as pltpu

_HIGHEST = jax.lax.Precision.HIGHEST


# --------------------- deterministic "parameters" (same as torch __init__) ---------------------

def _jpeg_tables():
    y_table = np.array(
        [[16, 11, 10, 16, 24, 40, 51, 61],
         [12, 12, 14, 19, 26, 58, 60, 55],
         [14, 13, 16, 24, 40, 57, 69, 56],
         [14, 17, 22, 29, 51, 87, 80, 62],
         [18, 22, 37, 56, 68, 109, 103, 77],
         [24, 35, 55, 64, 81, 104, 113, 92],
         [49, 64, 78, 87, 103, 121, 120, 101],
         [72, 92, 95, 98, 112, 100, 103, 99]], dtype=np.float32).T
    c_table = np.full((8, 8), 99.0, dtype=np.float32)
    c_table[:4, :4] = np.array([[17, 18, 24, 47],
                                [18, 21, 26, 66],
                                [24, 26, 56, 99],
                                [47, 66, 99, 99]], dtype=np.float32).T
    return y_table, c_table


def _idct_basis_64():
    """Folded alpha * cosine basis so the 8x8 IDCT is a single (64,64) matmul."""
    alpha = np.array([1.0 / np.sqrt(2.0)] + [1.0] * 7, dtype=np.float32)
    alpha2 = np.outer(alpha, alpha).astype(np.float32)              # indexed [x, y]
    basis = np.zeros((8, 8, 8, 8), dtype=np.float32)                # [x, y, u, v]
    for x in range(8):
        for y in range(8):
            for u in range(8):
                for v in range(8):
                    basis[x, y, u, v] = (math.cos((2 * u + 1) * x * math.pi / 16) *
                                         math.cos((2 * v + 1) * y * math.pi / 16))
    b64 = (alpha2[:, :, None, None] * basis).reshape(64, 64).astype(np.float32)
    return b64, alpha2, basis


def _block_diag2(m):
    n = m.shape[0]
    out = np.zeros((2 * n, 2 * n), np.float32)
    out[:n, :n] = m
    out[n:, n:] = m
    return out


def _pick_tile(n, target, mult):
    """Largest divisor of n that is <= target and a multiple of `mult`; falls back to n."""
    if n <= target:
        return n
    d = (target // mult) * mult
    while d >= mult:
        if n % d == 0:
            return d
        d -= mult
    return n


def _block_merge(x, h, w):
    # (B, n_blocks, 64) -> (B, h, w).  Pure layout glue, same as torch block_merging.
    b = x.shape[0]
    x = x.reshape(b, h // 8, w // 8, 8, 8)
    x = jnp.transpose(x, (0, 1, 3, 2, 4))
    return x.reshape(b, h, w)


# ---------------------------------------- Pallas kernels ----------------------------------------

def _deq_idct_kernel(by_ref, bc_ref, y_ref, cb_ref, cr_ref, yo_ref, cbo_ref, cro_ref):
    # by/bc:   (1, K, K) per-image pre-scaled IDCT bases (JPEG table, alpha, 0.25 and the
    #          per-image quantization factor already folded in).
    # y/cb/cr: (1, rows, K) packed DCT coefficients (K = 128 lane-dense or 64).
    # outputs: spatial 8x8 blocks, same packing, +128 level shift applied.
    by = by_ref[0]
    bc = bc_ref[0]
    yo_ref[0] = jnp.dot(y_ref[0], by, preferred_element_type=jnp.float32,
                        precision=_HIGHEST) + 128.0
    cbo_ref[0] = jnp.dot(cb_ref[0], bc, preferred_element_type=jnp.float32,
                         precision=_HIGHEST) + 128.0
    cro_ref[0] = jnp.dot(cr_ref[0], bc, preferred_element_type=jnp.float32,
                         precision=_HIGHEST) + 128.0


def _color_kernel(y_ref, cb_ref, cr_ref, ur_ref, uc_ref, out_ref):
    # y: (1, TH, W) luma rows; cb/cr: (1, TH/2, W/2) half-res chroma rows.
    # ur: (TH, TH/2), uc: (W/2, W): 0/1 nearest-neighbour upsampling operators (exact,
    # one nonzero per output element) -> upsample runs on the MXU, no lane interleave.
    y = y_ref[0]
    ur = ur_ref[...]
    uc = uc_ref[...]
    cb = jnp.dot(jnp.dot(ur, cb_ref[0], preferred_element_type=jnp.float32,
                         precision=_HIGHEST), uc,
                 preferred_element_type=jnp.float32, precision=_HIGHEST) - 128.0
    cr = jnp.dot(jnp.dot(ur, cr_ref[0], preferred_element_type=jnp.float32,
                         precision=_HIGHEST), uc,
                 preferred_element_type=jnp.float32, precision=_HIGHEST) - 128.0
    r = y + 1.402 * cr
    g = y - 0.344136 * cb - 0.714136 * cr
    b = y + 1.772 * cb
    inv255 = 1.0 / 255.0
    out_ref[0, 0] = jnp.clip(r, 0.0, 255.0) * inv255
    out_ref[0, 1] = jnp.clip(g, 0.0, 255.0) * inv255
    out_ref[0, 2] = jnp.clip(b, 0.0, 255.0) * inv255


# -------------------------------------------- module --------------------------------------------

class DiffJPEG:
    """JAX/Pallas port of models2/DiffJPEG.DiffJPEG forward (= decompress_jpeg)."""

    def __init__(self, height, width, differentiable=True, quality=80,
                 block_tile=1024, row_tile=256):
        assert height % 16 == 0 and width % 16 == 0
        self.height, self.width = height, width
        self.factor = 1.0   # matches `factor = 1` in the torch __init__
        # TODO(synk): `differentiable`/`quality` only select the compression rounding fn in
        # the original module; the decompression forward implemented here never uses them.

        y_t, c_t = _jpeg_tables()
        b64, _, _ = _idct_basis_64()
        # Fold the dequant tables into the IDCT basis (per-image 0.25*q is folded later).
        y_scaled = (y_t.reshape(64, 1) * b64).astype(np.float32)
        c_scaled = (c_t.reshape(64, 1) * b64).astype(np.float32)

        # Block counts and lane-dense repacking (two 8x8 blocks per 128-lane row).
        self.ny = (height // 8) * (width // 8)
        self.nc = (height // 16) * (width // 16)
        self.ny2 = self.ny // 2                       # ny is always a multiple of 4
        self.c_pack = 2 if self.nc % 2 == 0 else 1    # chroma stays 64-wide if nc is odd
        self.cw = 64 * self.c_pack
        self.ncr = self.nc // self.c_pack

        self.basis_y = jnp.asarray(_block_diag2(y_scaled))                       # (128,128)
        self.basis_c = jnp.asarray(_block_diag2(c_scaled) if self.c_pack == 2
                                   else c_scaled)                                # (cw, cw)

        # K1 tiling: tiles of chroma coefficient rows (Y rows move in lock-step).
        self.tncr = _pick_tile(self.ncr, block_tile, 8)
        self.tny2 = (self.ny2 // self.ncr) * self.tncr

        # K2 tiling: TH output rows per step (TH/2 chroma rows), full width W per tile.
        self.th = _pick_tile(height, row_tile, 16)
        th2, w2 = self.th // 2, width // 2
        ur = np.zeros((self.th, th2), np.float32)
        ur[np.arange(self.th), np.arange(self.th) // 2] = 1.0
        uc = np.zeros((w2, width), np.float32)
        uc[np.arange(width) // 2, np.arange(width)] = 1.0
        self.u_rows = jnp.asarray(ur)    # (TH, TH/2)  nearest-neighbour row upsample
        self.u_cols = jnp.asarray(uc)    # (W/2, W)    nearest-neighbour column upsample

        self._forward = jax.jit(self._forward_impl)

    # ----------------------------- pallas_call wrappers -----------------------------

    def _deq_idct(self, basis_y_b, basis_c_b, y2, cb2, cr2):
        B = y2.shape[0]
        tny2, tncr, cw = self.tny2, self.tncr, self.cw
        grid = (B, self.ncr // tncr)
        return pl.pallas_call(
            _deq_idct_kernel,
            out_shape=(jax.ShapeDtypeStruct((B, self.ny2, 128), jnp.float32),
                       jax.ShapeDtypeStruct((B, self.ncr, cw), jnp.float32),
                       jax.ShapeDtypeStruct((B, self.ncr, cw), jnp.float32)),
            grid=grid,
            in_specs=[
                pl.BlockSpec((1, 128, 128), lambda b, t: (b, 0, 0)),   # per-image Y basis
                pl.BlockSpec((1, cw, cw), lambda b, t: (b, 0, 0)),     # per-image C basis
                pl.BlockSpec((1, tny2, 128), lambda b, t: (b, t, 0)),  # Y coeff rows
                pl.BlockSpec((1, tncr, cw), lambda b, t: (b, t, 0)),   # Cb coeff rows
                pl.BlockSpec((1, tncr, cw), lambda b, t: (b, t, 0)),   # Cr coeff rows
            ],
            out_specs=(
                pl.BlockSpec((1, tny2, 128), lambda b, t: (b, t, 0)),
                pl.BlockSpec((1, tncr, cw), lambda b, t: (b, t, 0)),
                pl.BlockSpec((1, tncr, cw), lambda b, t: (b, t, 0)),
            ),
            compiler_params=pltpu.CompilerParams(
                dimension_semantics=("parallel", "parallel"),
                vmem_limit_bytes=64 * 1024 * 1024),
        )(basis_y_b, basis_c_b, y2, cb2, cr2)

    def _color(self, y_img, cb_img, cr_img):
        B, H, W = y_img.shape
        th, th2, w2 = self.th, self.th // 2, W // 2
        return pl.pallas_call(
            _color_kernel,
            out_shape=jax.ShapeDtypeStruct((B, 3, H, W), jnp.float32),
            grid=(B, H // th),
            in_specs=[
                pl.BlockSpec((1, th, W), lambda b, t: (b, t, 0)),
                pl.BlockSpec((1, th2, w2), lambda b, t: (b, t, 0)),
                pl.BlockSpec((1, th2, w2), lambda b, t: (b, t, 0)),
                pl.BlockSpec((th, th2), lambda b, t: (0, 0)),
                pl.BlockSpec((w2, W), lambda b, t: (0, 0)),
            ],
            out_specs=pl.BlockSpec((1, 3, th, W), lambda b, t: (b, 0, t, 0)),
            compiler_params=pltpu.CompilerParams(
                dimension_semantics=("parallel", "parallel"),
                vmem_limit_bytes=64 * 1024 * 1024),
        )(y_img, cb_img, cr_img, self.u_rows, self.u_cols)

    # ----------------------------------- forward -----------------------------------

    def _forward_impl(self, y, cb, cr, quantization):
        B = y.shape[0]
        H, W = self.height, self.width
        assert y.shape[1] == self.ny and cb.shape[1] == self.nc and cr.shape[1] == self.nc

        # Per-image 0.25*quantization folded into the (already table-folded) IDCT basis.
        scale = jnp.asarray(quantization, jnp.float32).reshape(B, 1, 1) * (0.25 * self.factor)
        basis_y_b = scale * self.basis_y[None]                       # (B, 128, 128)
        basis_c_b = scale * self.basis_c[None]                       # (B, cw, cw)

        # Lane-dense repacking: free reshapes (row-major collapse), no data movement.
        y2 = y.astype(jnp.float32).reshape(B, self.ny2, 128)
        cb2 = cb.astype(jnp.float32).reshape(B, self.ncr, self.cw)
        cr2 = cr.astype(jnp.float32).reshape(B, self.ncr, self.cw)

        ysp, cbsp, crsp = self._deq_idct(basis_y_b, basis_c_b, y2, cb2, cr2)

        # TODO(synk): block merging stays as an XLA transpose; the (col, x) interleave maps
        # poorly onto the (8,128) vreg layout so an in-kernel swizzle was not attempted.
        y_img = _block_merge(ysp.reshape(B, self.ny, 64), H, W)
        cb_img = _block_merge(cbsp.reshape(B, self.nc, 64), H // 2, W // 2)
        cr_img = _block_merge(crsp.reshape(B, self.nc, 64), H // 2, W // 2)

        return self._color(y_img, cb_img, cr_img)                    # (B, 3, H, W) in [0, 1]

    def __call__(self, y, cb, cr, quantization):
        return self._forward(y, cb, cr, quantization)


# ---------------------------------------- numpy reference ----------------------------------------

def _reference(y, cb, cr, quantization, H, W):
    y_t, c_t = _jpeg_tables()
    _, alpha2, basis4 = _idct_basis_64()
    fac = np.asarray(quantization, np.float32).reshape(-1, 1, 1, 1)

    def dequant_idct_merge(blocks, table, h, w):
        blocks = np.asarray(blocks, np.float32)
        deq = blocks * (table[None, None] * fac)
        scaled = deq * alpha2[None, None]
        spatial = 0.25 * np.tensordot(scaled, basis4, axes=2) + 128.0
        Bn = blocks.shape[0]
        return spatial.reshape(Bn, h // 8, w // 8, 8, 8).transpose(0, 1, 3, 2, 4).reshape(Bn, h, w)

    y_img = dequant_idct_merge(y, y_t, H, W)
    cb_img = dequant_idct_merge(cb, c_t, H // 2, W // 2)
    cr_img = dequant_idct_merge(cr, c_t, H // 2, W // 2)
    cb_up = cb_img.repeat(2, axis=1).repeat(2, axis=2)
    cr_up = cr_img.repeat(2, axis=1).repeat(2, axis=2)
    ycc = np.stack([y_img, cb_up, cr_up], axis=-1)                   # (B, H, W, 3)
    matrix = np.array([[1.0, 0.0, 1.402],
                       [1.0, -0.344136, -0.714136],
                       [1.0, 1.772, 0.0]], dtype=np.float32).T
    shift = np.array([0.0, -128.0, -128.0], dtype=np.float32)
    rgb = np.tensordot(ycc + shift, matrix, axes=1).transpose(0, 3, 1, 2)
    return np.clip(rgb, 0.0, 255.0) / 255.0


if __name__ == "__main__":
    def run_case(B, H, W, **tiles):
        n_y = (H // 8) * (W // 8)
        n_c = (H // 16) * (W // 16)
        key = jax.random.PRNGKey(0)
        k1, k2, k3, k4 = jax.random.split(key, 4)
        y = jnp.round(jax.random.normal(k1, (B, n_y, 8, 8), jnp.float32) * 30.0)
        cb = jnp.round(jax.random.normal(k2, (B, n_c, 8, 8), jnp.float32) * 30.0)
        cr = jnp.round(jax.random.normal(k3, (B, n_c, 8, 8), jnp.float32) * 30.0)
        quantization = jax.random.uniform(k4, (B,), jnp.float32, 0.3, 1.2)

        model = DiffJPEG(H, W, differentiable=True, quality=80, **tiles)
        out = jax.block_until_ready(model(y, cb, cr, quantization))

        ref = _reference(np.asarray(y), np.asarray(cb), np.asarray(cr),
                         np.asarray(quantization), H, W)
        assert out.shape == (B, 3, H, W)
        np.testing.assert_allclose(np.asarray(out), ref, rtol=1e-3, atol=2e-3)

    run_case(2, 16, 16)                                   # tiny, odd-N_c (64-wide chroma) path
    run_case(1, 128, 128, block_tile=8, row_tile=32)      # multi-tile grids + packed chroma path
    print("KERNEL_OK")
</pallas_src>

<mosaic_0001>
module attributes {stable_mosaic.version = 11 : i64} {
  func.func @_deq_idct_kernel(%arg0: i32, %arg1: i32, %arg2: memref<1x128x128xf32, #tpu.memory_space<vmem>>, %arg3: memref<1x64x64xf32, #tpu.memory_space<vmem>>, %arg4: memref<1x2x128xf32, #tpu.memory_space<vmem>>, %arg5: memref<1x1x64xf32, #tpu.memory_space<vmem>>, %arg6: memref<1x1x64xf32, #tpu.memory_space<vmem>>, %arg7: memref<1x2x128xf32, #tpu.memory_space<vmem>>, %arg8: memref<1x1x64xf32, #tpu.memory_space<vmem>>, %arg9: memref<1x1x64xf32, #tpu.memory_space<vmem>>) attributes {dimension_semantics = [#tpu.dimension_semantics<parallel>, #tpu.dimension_semantics<parallel>], iteration_bounds = array<i64: 2, 1>, scalar_prefetch = 0 : i64, scratch_operands = 0 : i64, tpu.core_type = #tpu.core_type<tc>, window_params = [{transform_indices = @transform_0, window_bounds = array<i64: 1, 128, 128>}, {transform_indices = @transform_1, window_bounds = array<i64: 1, 64, 64>}, {transform_indices = @transform_2, window_bounds = array<i64: 1, 2, 128>}, {transform_indices = @transform_3, window_bounds = array<i64: 1, 1, 64>}, {transform_indices = @transform_4, window_bounds = array<i64: 1, 1, 64>}, {transform_indices = @transform_5, window_bounds = array<i64: 1, 2, 128>}, {transform_indices = @transform_6, window_bounds = array<i64: 1, 1, 64>}, {transform_indices = @transform_7, window_bounds = array<i64: 1, 1, 64>}]} {
    %c0 = arith.constant 0 : index
    %c0_0 = arith.constant 0 : index
    %c0_1 = arith.constant 0 : index
    %0 = vector.load %arg2[%c0, %c0_0, %c0_1] : memref<1x128x128xf32, #tpu.memory_space<vmem>>, vector<1x128x128xf32>
    %1 = vector.shape_cast %0 : vector<1x128x128xf32> to vector<128x128xf32>
    %c0_2 = arith.constant 0 : index
    %c0_3 = arith.constant 0 : index
    %c0_4 = arith.constant 0 : index
    %2 = vector.load %arg3[%c0_2, %c0_3, %c0_4] : memref<1x64x64xf32, #tpu.memory_space<vmem>>, vector<1x64x64xf32>
    %3 = vector.shape_cast %2 : vector<1x64x64xf32> to vector<64x64xf32>
    %c0_5 = arith.constant 0 : index
    %c0_6 = arith.constant 0 : index
    %c0_7 = arith.constant 0 : index
    %4 = vector.load %arg4[%c0_5, %c0_6, %c0_7] : memref<1x2x128xf32, #tpu.memory_space<vmem>>, vector<1x2x128xf32>
    %5 = vector.shape_cast %4 : vector<1x2x128xf32> to vector<2x128xf32>
    %cst = arith.constant dense<0.000000e+00> : vector<2x128xf32>
    %6 = tpu.matmul %5, %1, %cst {dimension_numbers = #tpu.dot_dimension_numbers<[1], [0], [0], [1], [0, 0, 1, 1], [], []>, precision = #tpu.contract_precision<fp32>} : vector<2x128xf32>, vector<128x128xf32>, vector<2x128xf32> -> vector<2x128xf32>
    %cst_8 = arith.constant 1.280000e+02 : f32
    %7 = vector.broadcast %cst_8 : f32 to vector<2x128xf32>
    %8 = arith.addf %6, %7 : vector<2x128xf32>
    %c0_9 = arith.constant 0 : index
    %c0_10 = arith.constant 0 : index
    %c0_11 = arith.constant 0 : index
    %9 = vector.load %arg7[%c0_9, %c0_10, %c0_11] : memref<1x2x128xf32, #tpu.memory_space<vmem>>, vector<1x2x128xf32>
    %10 = vector.shape_cast %9 : vector<1x2x128xf32> to vector<2x128xf32>
    %11 = vector.shape_cast %8 : vector<2x128xf32> to vector<1x2x128xf32>
    tpu.vector_store %arg7[%c0_9, %c0_10, %c0_11], %11 {strides = array<i32>} : memref<1x2x128xf32, #tpu.memory_space<vmem>>, vector<1x2x128xf32>,
    %c0_12 = arith.constant 0 : index
    %c0_13 = arith.constant 0 : index
    %c0_14 = arith.constant 0 : index
    %12 = vector.load %arg5[%c0_12, %c0_13, %c0_14] : memref<1x1x64xf32, #tpu.memory_space<vmem>>, vector<1x1x64xf32>
    %13 = vector.shape_cast %12 : vector<1x1x64xf32> to vector<1x64xf32>
    %cst_15 = arith.constant dense<0.000000e+00> : vector<1x64xf32>
    %14 = tpu.matmul %13, %3, %cst_15 {dimension_numbers = #tpu.dot_dimension_numbers<[1], [0], [0], [1], [0, 0, 1, 1], [], []>, precision = #tpu.contract_precision<fp32>} : vector<1x64xf32>, vector<64x64xf32>, vector<1x64xf32> -> vector<1x64xf32>
    %cst_16 = arith.constant 1.280000e+02 : f32
    %15 = vector.broadcast %cst_16 : f32 to vector<1x64xf32>
    %16 = arith.addf %14, %15 : vector<1x64xf32>
    %c0_17 = arith.constant 0 : index
    %c0_18 = arith.constant 0 : index
    %c0_19 = arith.constant 0 : index
    %17 = vector.load %arg8[%c0_17, %c0_18, %c0_19] : memref<1x1x64xf32, #tpu.memory_space<vmem>>, vector<1x1x64xf32>
    %18 = vector.shape_cast %17 : vector<1x1x64xf32> to vector<1x64xf32>
    %19 = vector.shape_cast %16 : vector<1x64xf32> to vector<1x1x64xf32>
    tpu.vector_store %arg8[%c0_17, %c0_18, %c0_19], %19 {strides = array<i32>} : memref<1x1x64xf32, #tpu.memory_space<vmem>>, vector<1x1x64xf32>,
    %c0_20 = arith.constant 0 : index
    %c0_21 = arith.constant 0 : index
    %c0_22 = arith.constant 0 : index
    %20 = vector.load %arg6[%c0_20, %c0_21, %c0_22] : memref<1x1x64xf32, #tpu.memory_space<vmem>>, vector<1x1x64xf32>
    %21 = vector.shape_cast %20 : vector<1x1x64xf32> to vector<1x64xf32>
    %cst_23 = arith.constant dense<0.000000e+00> : vector<1x64xf32>
    %22 = tpu.matmul %21, %3, %cst_23 {dimension_numbers = #tpu.dot_dimension_numbers<[1], [0], [0], [1], [0, 0, 1, 1], [], []>, precision = #tpu.contract_precision<fp32>} : vector<1x64xf32>, vector<64x64xf32>, vector<1x64xf32> -> vector<1x64xf32>
    %cst_24 = arith.constant 1.280000e+02 : f32
    %23 = vector.broadcast %cst_24 : f32 to vector<1x64xf32>
    %24 = arith.addf %22, %23 : vector<1x64xf32>
    %c0_25 = arith.constant 0 : index
    %c0_26 = arith.constant 0 : index
    %c0_27 = arith.constant 0 : index
    %25 = vector.load %arg9[%c0_25, %c0_26, %c0_27] : memref<1x1x64xf32, #tpu.memory_space<vmem>>, vector<1x1x64xf32>
    %26 = vector.shape_cast %25 : vector<1x1x64xf32> to vector<1x64xf32>
    %27 = vector.shape_cast %24 : vector<1x64xf32> to vector<1x1x64xf32>
    tpu.vector_store %arg9[%c0_25, %c0_26, %c0_27], %27 {strides = array<i32>} : memref<1x1x64xf32, #tpu.memory_space<vmem>>, vector<1x1x64xf32>,
    return
  }
  func.func @transform_0(%arg0: i32, %arg1: i32) -> (i32, i32, i32) {
    %c0_i32 = arith.constant 0 : i32
    %c0_i32_0 = arith.constant 0 : i32
    %c0_i32_1 = arith.constant 0 : i32
    return %arg0, %c0_i32, %c0_i32_0 : i32, i32, i32
  }
  func.func @transform_1(%arg0: i32, %arg1: i32) -> (i32, i32, i32) {
    %c0_i32 = arith.constant 0 : i32
    %c0_i32_0 = arith.constant 0 : i32
    %c0_i32_1 = arith.constant 0 : i32
    return %arg0, %c0_i32, %c0_i32_0 : i32, i32, i32
  }
  func.func @transform_2(%arg0: i32, %arg1: i32) -> (i32, i32, i32) {
    %c0_i32 = arith.constant 0 : i32
    %c0_i32_0 = arith.constant 0 : i32
    return %arg0, %arg1, %c0_i32 : i32, i32, i32
  }
  func.func @transform_3(%arg0: i32, %arg1: i32) -> (i32, i32, i32) {
    %c0_i32 = arith.constant 0 : i32
    %c0_i32_0 = arith.constant 0 : i32
    return %arg0, %arg1, %c0_i32 : i32, i32, i32
  }
  func.func @transform_4(%arg0: i32, %arg1: i32) -> (i32, i32, i32) {
    %c0_i32 = arith.constant 0 : i32
    %c0_i32_0 = arith.constant 0 : i32
    return %arg0, %arg1, %c0_i32 : i32, i32, i32
  }
  func.func @transform_5(%arg0: i32, %arg1: i32) -> (i32, i32, i32) {
    %c0_i32 = arith.constant 0 : i32
    %c0_i32_0 = arith.constant 0 : i32
    return %arg0, %arg1, %c0_i32 : i32, i32, i32
  }
  func.func @transform_6(%arg0: i32, %arg1: i32) -> (i32, i32, i32) {
    %c0_i32 = arith.constant 0 : i32
    %c0_i32_0 = arith.constant 0 : i32
    return %arg0, %arg1, %c0_i32 : i32, i32, i32
  }
  func.func @transform_7(%arg0: i32, %arg1: i32) -> (i32, i32, i32) {
    %c0_i32 = arith.constant 0 : i32
    %c0_i32_0 = arith.constant 0 : i32
    return %arg0, %arg1, %c0_i32 : i32, i32, i32
  }
}

module attributes {stable_mosaic.version = 11 : i64} {
  func.func @_color_kernel(%arg0: i32, %arg1: i32, %arg2: memref<1x16x16xf32, #tpu.memory_space<vmem>>, %arg3: memref<1x8x8xf32, #tpu.memory_space<vmem>>, %arg4: memref<1x8x8xf32, #tpu.memory_space<vmem>>, %arg5: memref<16x8xf32, #tpu.memory_space<vmem>>, %arg6: memref<8x16xf32, #tpu.memory_space<vmem>>, %arg7: memref<1x3x16x16xf32, #tpu.memory_space<vmem>>) attributes {dimension_semantics = [#tpu.dimension_semantics<parallel>, #tpu.dimension_semantics<parallel>], iteration_bounds = array<i64: 2, 1>, scalar_prefetch = 0 : i64, scratch_operands = 0 : i64, tpu.core_type = #tpu.core_type<tc>, window_params = [{transform_indices = @transform_0, window_bounds = array<i64: 1, 16, 16>}, {transform_indices = @transform_1, window_bounds = array<i64: 1, 8, 8>}, {transform_indices = @transform_2, window_bounds = array<i64: 1, 8, 8>}, {pipeline_mode = #tpu.pipeline_mode<synchronous>, transform_indices = @transform_3, window_bounds = array<i64: 16, 8>}, {pipeline_mode = #tpu.pipeline_mode<synchronous>, transform_indices = @transform_4, window_bounds = array<i64: 8, 16>}, {transform_indices = @transform_5, window_bounds = array<i64: 1, 3, 16, 16>}]} {
    %c0 = arith.constant 0 : index
    %c0_0 = arith.constant 0 : index
    %c0_1 = arith.constant 0 : index
    %0 = vector.load %arg2[%c0, %c0_0, %c0_1] : memref<1x16x16xf32, #tpu.memory_space<vmem>>, vector<1x16x16xf32>
    %1 = vector.shape_cast %0 : vector<1x16x16xf32> to vector<16x16xf32>
    %c0_2 = arith.constant 0 : index
    %c0_3 = arith.constant 0 : index
    %2 = vector.load %arg5[%c0_2, %c0_3] : memref<16x8xf32, #tpu.memory_space<vmem>>, vector<16x8xf32>
    %c0_4 = arith.constant 0 : index
    %c0_5 = arith.constant 0 : index
    %3 = vector.load %arg6[%c0_4, %c0_5] : memref<8x16xf32, #tpu.memory_space<vmem>>, vector<8x16xf32>
    %c0_6 = arith.constant 0 : index
    %c0_7 = arith.constant 0 : index
    %c0_8 = arith.constant 0 : index
    %4 = vector.load %arg3[%c0_6, %c0_7, %c0_8] : memref<1x8x8xf32, #tpu.memory_space<vmem>>, vector<1x8x8xf32>
    %5 = vector.shape_cast %4 : vector<1x8x8xf32> to vector<8x8xf32>
    %cst = arith.constant dense<0.000000e+00> : vector<16x8xf32>
    %6 = tpu.matmul %2, %5, %cst {dimension_numbers = #tpu.dot_dimension_numbers<[1], [0], [0], [1], [0, 0, 1, 1], [], []>, precision = #tpu.contract_precision<fp32>} : vector<16x8xf32>, vector<8x8xf32>, vector<16x8xf32> -> vector<16x8xf32>
    %cst_9 = arith.constant dense<0.000000e+00> : vector<16x16xf32>
    %7 = tpu.matmul %6, %3, %cst_9 {dimension_numbers = #tpu.dot_dimension_numbers<[1], [0], [0], [1], [0, 0, 1, 1], [], []>, precision = #tpu.contract_precision<fp32>} : vector<16x8xf32>, vector<8x16xf32>, vector<16x16xf32> -> vector<16x16xf32>
    %cst_10 = arith.constant 1.280000e+02 : f32
    %8 = vector.broadcast %cst_10 : f32 to vector<16x16xf32>
    %9 = arith.subf %7, %8 : vector<16x16xf32>
    %c0_11 = arith.constant 0 : index
    %c0_12 = arith.constant 0 : index
    %c0_13 = arith.constant 0 : index
    %10 = vector.load %arg4[%c0_11, %c0_12, %c0_13] : memref<1x8x8xf32, #tpu.memory_space<vmem>>, vector<1x8x8xf32>
    %11 = vector.shape_cast %10 : vector<1x8x8xf32> to vector<8x8xf32>
    %cst_14 = arith.constant dense<0.000000e+00> : vector<16x8xf32>
    %12 = tpu.matmul %2, %11, %cst_14 {dimension_numbers = #tpu.dot_dimension_numbers<[1], [0], [0], [1], [0, 0, 1, 1], [], []>, precision = #tpu.contract_precision<fp32>} : vector<16x8xf32>, vector<8x8xf32>, vector<16x8xf32> -> vector<16x8xf32>
    %cst_15 = arith.constant dense<0.000000e+00> : vector<16x16xf32>
    %13 = tpu.matmul %12, %3, %cst_15 {dimension_numbers = #tpu.dot_dimension_numbers<[1], [0], [0], [1], [0, 0, 1, 1], [], []>, precision = #tpu.contract_precision<fp32>} : vector<16x8xf32>, vector<8x16xf32>, vector<16x16xf32> -> vector<16x16xf32>
    %cst_16 = arith.constant 1.280000e+02 : f32
    %14 = vector.broadcast %cst_16 : f32 to vector<16x16xf32>
    %15 = arith.subf %13, %14 : vector<16x16xf32>
    %cst_17 = arith.constant 1.402000e+00 : f32
    %16 = vector.broadcast %cst_17 : f32 to vector<16x16xf32>
    %17 = arith.mulf %16, %15 : vector<16x16xf32>
    %18 = arith.addf %1, %17 : vector<16x16xf32>
    %cst_18 = arith.constant 3.441360e-01 : f32
    %19 = vector.broadcast %cst_18 : f32 to vector<16x16xf32>
    %20 = arith.mulf %19, %9 : vector<16x16xf32>
    %21 = arith.subf %1, %20 : vector<16x16xf32>
    %cst_19 = arith.constant 7.141360e-01 : f32
    %22 = vector.broadcast %cst_19 : f32 to vector<16x16xf32>
    %23 = arith.mulf %22, %15 : vector<16x16xf32>
    %24 = arith.subf %21, %23 : vector<16x16xf32>
    %cst_20 = arith.constant 1.772000e+00 : f32
    %25 = vector.broadcast %cst_20 : f32 to vector<16x16xf32>
    %26 = arith.mulf %25, %9 : vector<16x16xf32>
    %27 = arith.addf %1, %26 : vector<16x16xf32>
    %cst_21 = arith.constant 0.000000e+00 : f32
    %cst_22 = arith.constant 2.550000e+02 : f32
    %28 = vector.broadcast %cst_21 : f32 to vector<16x16xf32>
    %29 = arith.maximumf %28, %18 : vector<16x16xf32>
    %30 = vector.broadcast %cst_22 : f32 to vector<16x16xf32>
    %31 = arith.minimumf %30, %29 : vector<16x16xf32>
    %cst_23 = arith.constant 0.00392156886 : f32
    %32 = vector.broadcast %cst_23 : f32 to vector<16x16xf32>
    %33 = arith.mulf %31, %32 : vector<16x16xf32>
    %c0_24 = arith.constant 0 : index
    %c0_25 = arith.constant 0 : index
    %c0_26 = arith.constant 0 : index
    %c0_27 = arith.constant 0 : index
    %34 = vector.load %arg7[%c0_24, %c0_25, %c0_26, %c0_27] : memref<1x3x16x16xf32, #tpu.memory_space<vmem>>, vector<1x1x16x16xf32>
    %35 = vector.shape_cast %34 : vector<1x1x16x16xf32> to vector<16x16xf32>
    %36 = vector.shape_cast %33 : vector<16x16xf32> to vector<1x1x16x16xf32>
    tpu.vector_store %arg7[%c0_24, %c0_25, %c0_26, %c0_27], %36 {strides = array<i32>} : memref<1x3x16x16xf32, #tpu.memory_space<vmem>>, vector<1x1x16x16xf32>,
    %cst_28 = arith.constant 0.000000e+00 : f32
    %cst_29 = arith.constant 2.550000e+02 : f32
    %37 = vector.broadcast %cst_28 : f32 to vector<16x16xf32>
    %38 = arith.maximumf %37, %24 : vector<16x16xf32>
    %39 = vector.broadcast %cst_29 : f32 to vector<16x16xf32>
    %40 = arith.minimumf %39, %38 : vector<16x16xf32>
    %cst_30 = arith.constant 0.00392156886 : f32
    %41 = vector.broadcast %cst_30 : f32 to vector<16x16xf32>
    %42 = arith.mulf %40, %41 : vector<16x16xf32>
    %c0_31 = arith.constant 0 : index
    %c1 = arith.constant 1 : index
    %c0_32 = arith.constant 0 : index
    %c0_33 = arith.constant 0 : index
    %43 = vector.load %arg7[%c0_31, %c1, %c0_32, %c0_33] : memref<1x3x16x16xf32, #tpu.memory_space<vmem>>, vector<1x1x16x16xf32>
    %44 = vector.shape_cast %43 : vector<1x1x16x16xf32> to vector<16x16xf32>
    %45 = vector.shape_cast %42 : vector<16x16xf32> to vector<1x1x16x16xf32>
    tpu.vector_store %arg7[%c0_31, %c1, %c0_32, %c0_33], %45 {strides = array<i32>} : memref<1x3x16x16xf32, #tpu.memory_space<vmem>>, vector<1x1x16x16xf32>,
    %cst_34 = arith.constant 0.000000e+00 : f32
    %cst_35 = arith.constant 2.550000e+02 : f32
    %46 = vector.broadcast %cst_34 : f32 to vector<16x16xf32>
    %47 = arith.maximumf %46, %27 : vector<16x16xf32>
    %48 = vector.broadcast %cst_35 : f32 to vector<16x16xf32>
    %49 = arith.minimumf %48, %47 : vector<16x16xf32>
    %cst_36 = arith.constant 0.00392156886 : f32
    %50 = vector.broadcast %cst_36 : f32 to vector<16x16xf32>
    %51 = arith.mulf %49, %50 : vector<16x16xf32>
    %c0_37 = arith.constant 0 : index
    %c2 = arith.constant 2 : index
    %c0_38 = arith.constant 0 : index
    %c0_39 = arith.constant 0 : index
    %52 = vector.load %arg7[%c0_37, %c2, %c0_38, %c0_39] : memref<1x3x16x16xf32, #tpu.memory_space<vmem>>, vector<1x1x16x16xf32>
    %53 = vector.shape_cast %52 : vector<1x1x16x16xf32> to vector<16x16xf32>
    %54 = vector.shape_cast %51 : vector<16x16xf32> to vector<1x1x16x16xf32>
    tpu.vector_store %arg7[%c0_37, %c2, %c0_38, %c0_39], %54 {strides = array<i32>} : memref<1x3x16x16xf32, #tpu.memory_space<vmem>>, vector<1x1x16x16xf32>,
    return
  }
  func.func @transform_0(%arg0: i32, %arg1: i32) -> (i32, i32, i32) {
    %c0_i32 = arith.constant 0 : i32
    %c0_i32_0 = arith.constant 0 : i32
    return %arg0, %arg1, %c0_i32 : i32, i32, i32
  }
  func.func @transform_1(%arg0: i32, %arg1: i32) -> (i32, i32, i32) {
    %c0_i32 = arith.constant 0 : i32
    %c0_i32_0 = arith.constant 0 : i32
    return %arg0, %arg1, %c0_i32 : i32, i32, i32
  }
  func.func @transform_2(%arg0: i32, %arg1: i32) -> (i32, i32, i32) {
    %c0_i32 = arith.constant 0 : i32
    %c0_i32_0 = arith.constant 0 : i32
    return %arg0, %arg1, %c0_i32 : i32, i32, i32
  }
  func.func @transform_3(%arg0: i32, %arg1: i32) -> (i32, i32) {
    %c0_i32 = arith.constant 0 : i32
    %c0_i32_0 = arith.constant 0 : i32
    %c0_i32_1 = arith.constant 0 : i32
    return %c0_i32, %c0_i32_0 : i32, i32
  }
  func.func @transform_4(%arg0: i32, %arg1: i32) -> (i32, i32) {
    %c0_i32 = arith.constant 0 : i32
    %c0_i32_0 = arith.constant 0 : i32
    %c0_i32_1 = arith.constant 0 : i32
    return %c0_i32, %c0_i32_0 : i32, i32
  }
  func.func @transform_5(%arg0: i32, %arg1: i32) -> (i32, i32, i32, i32) {
    %c0_i32 = arith.constant 0 : i32
    %c0_i32_0 = arith.constant 0 : i32
    %c0_i32_1 = arith.constant 0 : i32
    return %arg0, %c0_i32, %arg1, %c0_i32_0 : i32, i32, i32, i32
  }
}

</mosaic_0001>

<bundles_post_ra>
// kernel: _forward_impl.2
= control target key start
LH: loop header
LB: loop body
LE: loop exit
PB: predicated region body
PF: predicated region fallthrough
CT: control target
= control target key end

     0   :  { %s1576_s24 = smov 0   ;;  %s1578_s25 = smov 0   ;;  %s2122_s0 = inlined_call_operand.vmem [shape: f32[2,128,128], index: 0, kind: input, shape index: {}]   ;;  %s2123_s1 = inlined_call_operand.vmem [shape: f32[2,64,64], index: 1, kind: input, shape index: {}]   ;;  %s2124_s2 = inlined_call_operand.vmem [shape: f32[2,2,128], index: 2, kind: input, shape index: {}]   ;;  %s2125_s3 = inlined_call_operand.vmem [shape: f32[2,1,64], index: 3, kind: input, shape index: {}]   ;;  %s2126_s4 = inlined_call_operand.vmem [shape: f32[2,1,64], index: 4, kind: input, shape index: {}]   ;;  %s2127_s5 = inlined_call_operand.vmem [shape: f32[2,2,128], index: 5, kind: output, shape index: {0}]   ;;  %s2128_s6 = inlined_call_operand.vmem [shape: f32[2,1,64], index: 6, kind: output, shape index: {1}]   ;;  %s2129_s7 = inlined_call_operand.vmem [shape: f32[2,1,64], index: 7, kind: output, shape index: {2}]  }
   0x1   :  { %s1580_s26 = smov 0  }
   0x2 LB: > { %s30_s27 = sadd.s32 1, %s1530_s25  ;;  %p1477_p0 = scmp.ge.s32.totalorder %s1534_s26, 1  ;;  %s1534_s26 = sphi %s1580_s26, %s18_s26   ;;  %s1530_s25 = sphi %s1578_s25, %s2169_s25   ;;  %s1526_s24 = sphi %s1576_s24, %s2168_s24  }
   0x3   : > { %p32_p1 = scmp.ge.s32.totalorder %s30_s27, 2  ;;  %p310_p2 = scmp.lt.s32.totalorder %s1534_s26, 3 }
   0x5   : > { %s2171_s27 = smov (%p32_p1, %s30_s27), 0  ;;  %p311_p3 = pnand %p1477_p0, %p310_p2 }
   0x7   : > { %314 = sbr.rel (%p311_p3) target bundleno = 261 (0x105), region = 40 }
   0xc   : > { %p380_p4 = scmp.lt.s32.totalorder %s1526_s24, 1  ;;  %vm796_vm0 = vcmask 523264   ;;  %vm1037_vm1 = vcmask 516096  }
   0xe   : > { %s2173_s24 = smov (!%p380_p4, %s1526_s24), 1 }
   0xf   : > { %s1486_s28 = sshll.u32 %s2173_s24, 7  ;;  %s1487_s9 = sshll.u32 %s2173_s24, 6 }
  0x10   : > { %s1600_s8 = scalar_lea.vmem %s2122_s0, %s1486_s28  ;;  %s1707_s12 = scalar_lea.vmem %s2123_s1, %s1487_s9 }
  0x11   : > { %v443_v0 = vld [vmem:[%s1600_s8 + $0x78] sm:$0xff]  ;;  %v442_v1 = vld [vmem:[%s1600_s8 + $0x70] sm:$0xff]  ;;  %v441_v2 = vld [vmem:[%s1600_s8 + $0x68] sm:$0xff]  ;;  %s1482_s13 = sshll.u32 %s2173_s24, 1  ;;  %s402_s19 = scalar_lea.vmem %s2125_s3, %s2173_s24 }
  0x12   : > { %v1605_v3 = vand.u32 4294901760, %v443_v0  ;;  %v1607_v4 = vand.u32 4294901760, %v442_v1  ;;  %v1609_v5 = vand.u32 4294901760, %v441_v2  ;;  %v440_v6 = vld [vmem:[%s1600_s8 + $0x60] sm:$0xff]  ;;  %v439_v7 = vld [vmem:[%s1600_s8 + $0x58] sm:$0xff]  ;;  %v438_v8 = vld [vmem:[%s1600_s8 + $0x50] sm:$0xff]  ;;  %s396_s16 = scalar_lea.vmem %s2124_s2, %s1482_s13  ;;  %s408_s22 = scalar_lea.vmem %s2126_s4, %s2173_s24 }
  0x13   : > { %v1614_v9 = vand.u32 4294901760, %v440_v6  ;;  %v1616_v10 = vand.u32 4294901760, %v439_v7  ;;  %v1618_v11 = vand.u32 4294901760, %v438_v8  ;;  %v437_v12 = vld [vmem:[%s1600_s8 + $0x48] sm:$0xff]  ;;  %v436_v13 = vld [vmem:[%s1600_s8 + $0x40] sm:$0xff]  ;;  %v435_v21 = vld [vmem:[%s1600_s8 + $0x38] sm:$0xff]  ;;  %s415_s29 = scalar_lea.vmem %s2127_s5, %s1482_s13  ;;  %s421_s9 = scalar_lea.vmem %s2128_s6, %s2173_s24 }
  0x14   : > { %454 = vmatpush.msra.mxu0 %v1605_v3  ;;  %v1624_v14 = vsub.f32 %v443_v0, %v1605_v3  ;;  %v1627_v15 = vsub.f32 %v442_v1, %v1607_v4  ;;  %650 = vmatpush.msra.mxu3 %v1605_v3  ;;  %v1631_v16 = vsub.f32 %v441_v2, %v1609_v5  ;;  %v1633_v17 = vand.u32 4294901760, %v437_v12  ;;  %v434_v26 = vld [vmem:[%s1600_s8 + $0x30] sm:$0xff]  ;;  %v433_v36 = vld [vmem:[%s1600_s8 + $0x28] sm:$0xff]  ;;  %v432_v42 = vld [vmem:[%s1600_s8 + $0x20] sm:$0xff] }
  0x15   : > { %v1636_v18 = vsub.f32 %v440_v6, %v1614_v9  ;;  %v1639_v19 = vsub.f32 %v439_v7, %v1616_v10  ;;  %v1642_v20 = vsub.f32 %v438_v8, %v1618_v11  ;;  %v1650_v25 = vand.u32 4294901760, %v436_v13  ;;  %v431_v48 = vld [vmem:[%s1600_s8 + $0x18] sm:$0xff]  ;;  %v430_v54 = vld [vmem:[%s1600_s8 + $0x10] sm:$0xff]  ;;  %v429_v59 = vld [vmem:[%s1600_s8 + $0x8] sm:$0xff] }
  0x16   : > { %456 = vmatpush.msra.mxu0 %v1607_v4  ;;  %597 = vmatpush.msra.mxu2 %v1624_v14  ;;  %v496_v22 = vand.u32 4294901760, %v1624_v14  ;;  %v2143_v23 = vand.u32 4294901760, %v1627_v15  ;;  %v2142_v24 = vand.u32 4294901760, %v1631_v16  ;;  %v1657_v29 = vsub.f32 %v437_v12, %v1633_v17  ;;  %v451_v60 = vld [vmem:[%s1707_s12 + $0x38] sm:$0xff]  ;;  %v428_v2 = vld [vmem:[%s1600_s8] sm:$0xff]  ;;  %v450_v6 = vld [vmem:[%s1707_s12 + $0x30] sm:$0xff] }
  0x17   : > { %652 = vmatpush.msra.mxu3 %v1607_v4  ;;  %v2141_v27 = vand.u32 4294901760, %v1636_v18  ;;  %v2139_v28 = vand.u32 4294901760, %v1639_v19  ;;  %v1670_v33 = vand.u32 4294901760, %v435_v21  ;;  %v1673_v34 = vand.u32 4294901760, %v434_v26 }
  0x18   : > { %458 = vmatpush.msra.mxu0 %v1609_v5  ;;  %600 = vmatpush.msra.mxu2 %v1627_v15  ;;  %v497_v30 = vsub.f32 %v1624_v14, %v496_v22  ;;  %v503_v31 = vsub.f32 %v1627_v15, %v2143_v23  ;;  %v509_v32 = vsub.f32 %v1631_v16, %v2142_v24  ;;  %v2138_v35 = vand.u32 4294901760, %v1642_v20 }
  0x19   : > { %654 = vmatpush.msra.mxu3 %v1609_v5  ;;  %v515_v39 = vsub.f32 %v1636_v18, %v2141_v27  ;;  %v1683_v40 = vsub.f32 %v436_v13, %v1650_v25  ;;  %v521_v41 = vsub.f32 %v1639_v19, %v2139_v28  ;;  %v1692_v44 = vand.u32 4294901760, %v433_v36 }
  0x1a   : > { %460 = vmatpush.msra.mxu0 %v1614_v9  ;;  %v498_v37 = vand.u32 4294901760, %v497_v30  ;;  %603 = vmatpush.msra.mxu2 %v1631_v16  ;;  %v504_v38 = vand.u32 4294901760, %v503_v31  ;;  %v510_v43 = vand.u32 4294901760, %v509_v32  ;;  %v2137_v45 = vand.u32 4294901760, %v1657_v29  ;;  %v449_v32 = vld [vmem:[%s1707_s12 + $0x28] sm:$0xff] }
  0x1b   : > { %656 = vmatpush.msra.mxu3 %v1614_v9  ;;  %v1696_v46 = vsub.f32 %v435_v21, %v1670_v33  ;;  %v527_v47 = vsub.f32 %v1642_v20, %v2138_v35  ;;  %v516_v49 = vand.u32 4294901760, %v515_v39  ;;  %v1710_v50 = vand.u32 4294901760, %v432_v42 }
  0x1c   : > { %462 = vmatpush.msra.mxu0 %v1616_v10  ;;  %499 = vmatpush.msra.mxu1 %v498_v37  ;;  %v2135_v51 = vand.u32 4294901760, %v1683_v40  ;;  %v1714_v52 = vsub.f32 %v434_v26, %v1673_v34  ;;  %v522_v53 = vand.u32 4294901760, %v521_v41  ;;  %v533_v55 = vsub.f32 %v1657_v29, %v2137_v45 }
  0x1d   : > { %606 = vmatpush.msra.mxu2 %v1636_v18  ;;  %658 = vmatpush.msra.mxu3 %v1616_v10  ;;  %v1723_v56 = vand.u32 4294901760, %v431_v48  ;;  %v2134_v57 = vand.u32 4294901760, %v1696_v46  ;;  %v1727_v58 = vsub.f32 %v433_v36, %v1692_v44  ;;  %v528_v61 = vand.u32 4294901760, %v527_v47 }
  0x1e   : > { %464 = vmatpush.msra.mxu0 %v1618_v11  ;;  %505 = vmatpush.msra.mxu1 %v504_v38  ;;  %v539_v62 = vsub.f32 %v1683_v40, %v2135_v51  ;;  %v1737_v63 = vand.u32 4294901760, %v430_v54  ;;  %v2132_v0 = vand.u32 4294901760, %v1714_v52  ;;  %v1741_v1 = vsub.f32 %v432_v42, %v1710_v50 }
  0x1f   : > { %609 = vmatpush.msra.mxu2 %v1639_v19  ;;  %660 = vmatpush.msra.mxu3 %v1618_v11  ;;  %v1747_v7 = vand.u32 4294901760, %v429_v59  ;;  %v1749_v8 = vand.u32 4294901760, %v451_v60  ;;  %v534_v12 = vand.u32 4294901760, %v533_v55  ;;  %v545_v13 = vsub.f32 %v1696_v46, %v2134_v57 }
  0x20   : > { %466 = vmatpush.msra.mxu0 %v1633_v17  ;;  %511 = vmatpush.msra.mxu1 %v510_v43  ;;  %v2131_v21 = vand.u32 4294901760, %v1727_v58  ;;  %v1757_v26 = vsub.f32 %v431_v48, %v1723_v56  ;;  %v1761_v30 = vand.u32 4294901760, %v428_v2  ;;  %v1763_v31 = vand.u32 4294901760, %v450_v6  ;;  %v448_v43 = vld [vmem:[%s1707_s12 + $0x20] sm:$0xff] }
  0x21   : > { %612 = vmatpush.msra.mxu2 %v1642_v20  ;;  %662 = vmatpush.msra.mxu3 %v1633_v17  ;;  %v540_v36 = vand.u32 4294901760, %v539_v62  ;;  %v551_v37 = vsub.f32 %v1714_v52, %v2132_v0  ;;  %v2130_v38 = vand.u32 4294901760, %v1741_v1  ;;  %v1772_v39 = vsub.f32 %v430_v54, %v1737_v63 }
  0x22   : > { %468 = vmatpush.msra.mxu0 %v1650_v25  ;;  %517 = vmatpush.msra.mxu1 %v516_v49  ;;  %v1777_v41 = vsub.f32 %v429_v59, %v1747_v7  ;;  %v1780_v42 = vsub.f32 %v451_v60, %v1749_v8  ;;  %v546_v47 = vand.u32 4294901760, %v545_v13  ;;  %v557_v48 = vsub.f32 %v1727_v58, %v2131_v21  ;;  %v447_v59 = vld [vmem:[%s1707_s12 + $0x18] sm:$0xff]  ;;  %v446_v13 = vld [vmem:[%s1707_s12 + $0x10] sm:$0xff] }
  0x23   : > { %615 = vmatpush.msra.mxu2 %v1657_v29  ;;  %664 = vmatpush.msra.mxu3 %v1650_v25  ;;  %v2133_v49 = vand.u32 4294901760, %v1757_v26  ;;  %v1793_v54 = vsub.f32 %v428_v2, %v1761_v30  ;;  %v1796_v55 = vsub.f32 %v450_v6, %v1763_v31  ;;  %v552_v60 = vand.u32 4294901760, %v551_v37 }
  0x24   : > { %470 = vmatpush.msra.mxu0 %v1670_v33  ;;  %523 = vmatpush.msra.mxu1 %v522_v53  ;;  %v1788_v53 = vand.u32 4294901760, %v449_v32  ;;  %v2136_v62 = vand.u32 4294901760, %v1772_v39  ;;  %v2140_v2 = vand.u32 4294901760, %v1777_v41  ;;  %v1810_v6 = vand.u32 4294901760, %v1780_v42 }
  0x25   : > { %618 = vmatpush.msra.mxu2 %v1683_v40  ;;  %666 = vmatpush.msra.mxu3 %v1670_v33  ;;  %v569_v37 = vsub.f32 %v1757_v26, %v2133_v49  ;;  %v1821_v21 = vand.u32 4294901760, %v447_v59  ;;  %v2144_v0 = vand.u32 4294901760, %v1793_v54  ;;  %v1837_v51 = vand.u32 4294901760, %v446_v13 }
  0x26   : > { %472 = vmatpush.msra.mxu0 %v1673_v34  ;;  %529 = vmatpush.msra.mxu1 %v528_v61  ;;  %v563_v61 = vsub.f32 %v1741_v1, %v2130_v38  ;;  %v1819_v38 = vsub.f32 %v449_v32, %v1788_v53  ;;  %v575_v32 = vsub.f32 %v1772_v39, %v2136_v62 }
  0x27   : > { %621 = vmatpush.msra.mxu2 %v1696_v46  ;;  %668 = vmatpush.msra.mxu3 %v1673_v34  ;;  %v570_v62 = vand.u32 4294901760, %v569_v37  ;;  %v1857_v35 = vsub.f32 %v447_v59, %v1821_v21  ;;  %v452_v37 = vld [vmem:[%s396_s16] sm:$0x3]  ;;  %v1873_v24 = vsub.f32 %v446_v13, %v1837_v51 }
  0x28   : > { %474 = vmatpush.msra.mxu0 %v1692_v44  ;;  %535 = vmatpush.msra.mxu1 %v534_v12  ;;  %v1804_v12 = vand.u32 4294901760, %v448_v43  ;;  %v564_v49 = vand.u32 4294901760, %v563_v61  ;;  %v844_v61 = vsub.f32 %v1780_v42, %v1810_v6  ;;  %v1854_v45 = vand.u32 4294901760, %v1819_v38 }
  0x29   : > { %624 = vmatpush.msra.mxu2 %v1714_v52  ;;  %670 = vmatpush.msra.mxu3 %v1692_v44  ;;  %v576_v27 = vand.u32 4294901760, %v575_v32  ;;  %v1886_v13 = vand.u32 4294901760, %v1857_v35  ;;  %v1891_v14 = vand.u32 4294901760, %v452_v37 }
  0x2a   : > { %476 = vmatpush.msra.mxu0 %v1710_v50  ;;  %541 = vmatpush.msra.mxu1 %v540_v36  ;;  %v558_v36 = vand.u32 4294901760, %v557_v48  ;;  %v445_v48 = vld [vmem:[%s1707_s12 + $0x8] sm:$0xff]  ;;  %v1835_v57 = vsub.f32 %v448_v43, %v1804_v12  ;;  %v444_v43 = vld [vmem:[%s1707_s12] sm:$0xff]  ;;  %2150 = vst [vmem:[#allocation3_spill] sm:$0xff] %v1854_v45  ;;  %s427_s12 = scalar_lea.vmem %s2129_s7, %s2173_s24 }
  0x2b   : > { %627 = vmatpush.msra.mxu2 %v1727_v58  ;;  %672 = vmatpush.msra.mxu3 %v1710_v50  ;;  %v1859_v28 = vand.u32 4294901760, %v445_v48  ;;  %v1875_v23 = vand.u32 4294901760, %v444_v43 }
  0x2c   : > { %478 = vmatpush.msra.mxu0 %v1723_v56  ;;  %547 = vmatpush.msra.mxu1 %v546_v47  ;;  %v1827_v47 = vand.u32 4294901760, %v1796_v55  ;;  %v1870_v59 = vand.u32 4294901760, %v1835_v57 }
  0x2d   : > { %630 = vmatpush.msra.mxu2 %v1741_v1  ;;  %674 = vmatpush.msra.mxu3 %v1723_v56  ;;  %v1889_v32 = vsub.f32 %v445_v48, %v1859_v28  ;;  %v1905_v48 = vsub.f32 %v444_v43, %v1875_v23 }
  0x2e   : > { %2149 = vst [vmem:[#allocation2_spill] sm:$0xff] %v1827_v47  ;;  %480 = vmatpush.msra.mxu0 %v1737_v63  ;;  %553 = vmatpush.msra.mxu1 %v552_v60  ;;  %v581_v60 = vsub.f32 %v1777_v41, %v2140_v2  ;;  %v587_v2 = vsub.f32 %v1793_v54, %v2144_v0 }
  0x2f   : > { %633 = vmatpush.msra.mxu2 %v1757_v26  ;;  %676 = vmatpush.msra.mxu3 %v1737_v63  ;;  %v1920_v43 = vand.u32 4294901760, %v1889_v32 }
  0x30   : > { %482 = vmatpush.msra.mxu0 %v1747_v7  ;;  %559 = vmatpush.msra.mxu1 %v558_v36  ;;  %v850_v36 = vsub.f32 %v1796_v55, %v1827_v47  ;;  %v582_v0 = vand.u32 4294901760, %v581_v60  ;;  %v1880_v47 = vand.u32 4294901760, %v844_v61  ;;  %v588_v60 = vand.u32 4294901760, %v587_v2 }
  0x31   : > { %636 = vmatpush.msra.mxu2 %v1772_v39  ;;  %678 = vmatpush.msra.mxu3 %v1747_v7  ;;  %v862_v61 = vsub.f32 %v1835_v57, %v1870_v59  ;;  %v868_v2 = vsub.f32 %v1857_v35, %v1886_v13 }
  0x32   : > { %484 = vmatpush.msra.mxu0 %v1761_v30  ;;  %565 = vmatpush.msra.mxu1 %v564_v49  ;;  %v856_v49 = vsub.f32 %v1819_v38, %v1854_v45  ;;  %v1902_v45 = vand.u32 4294901760, %v1873_v24 }
  0x33   : > { %639 = vmatpush.msra.mxu2 %v1777_v41  ;;  %680 = vmatpush.msra.mxu3 %v1761_v30 }
  0x34   : > { %691 = vmatpush.msrb.mxu0 %v496_v22  ;;  %571 = vmatpush.msra.mxu1 %v570_v62  ;;  %v2151_v22 = vand.u32 4294901760, %v1627_v15  ;;  %v1896_v62 = vand.u32 4294901760, %v850_v36  ;;  %v2152_v15 = vand.u32 4294901760, %v1631_v16  ;;  %v486_v16 = vsub.f32 %v452_v37, %v1891_v14 }
  0x35   : > { %642 = vmatpush.msra.mxu2 %v1793_v54  ;;  %846 = vmatpush.msrb.mxu3 %v1880_v47  ;;  %v2153_v36 = vand.u32 4294901760, %v1636_v18  ;;  %v2154_v37 = vand.u32 4294901760, %v1639_v19  ;;  %v1939_v18 = vand.u32 4294901760, %v868_v2 }
  0x36   : > { %695 = vmatpush.msrb.mxu0 %v2151_v22  ;;  %577 = vmatpush.msra.mxu1 %v576_v27  ;;  %v1915_v27 = vand.u32 4294901760, %v856_v49  ;;  %v874_v49 = vsub.f32 %v1873_v24, %v1902_v45  ;;  %v1932_v22 = vand.u32 4294901760, %v1905_v48 }
  0x37   : > { %809 = vmatpush.msrb.mxu2 %v1749_v8  ;;  %852 = vmatpush.msrb.mxu3 %v1896_v62 }
  0x38   : > { %699 = vmatpush.msrb.mxu0 %v2152_v15  ;;  %583 = vmatpush.msra.mxu1 %v582_v0  ;;  %v1927_v0 = vand.u32 4294901760, %v862_v61  ;;  %v795_v15 = vld [vmem:[%s402_s19] sm:$0x1]  ;;  %v487_v61 = vand.u32 4294901760, %v486_v16  ;;  %v886_v2 = vsub.f32 %v1905_v48, %v1932_v22 }
  0x39   : > { %811 = vmatpush.msrb.mxu2 %v1763_v31  ;;  %858 = vmatpush.msrb.mxu3 %v1915_v27  ;;  %v798_v19 = vsel %vm796_vm0, %v795_v15, 0 }
  0x3a   : > { %703 = vmatpush.msrb.mxu0 %v2153_v36  ;;  %589 = vmatpush.msra.mxu1 %v588_v60  ;;  %v880_v60 = vsub.f32 %v1889_v32, %v1920_v43  ;;  %v2155_v36 = vand.u32 4294901760, %v1642_v20  ;;  %v488_v20 = vsub.f32 %v486_v16, %v487_v61  ;;  %v1960_v15 = vand.u32 4294901760, %v798_v19 }
  0x3b   : > { %813 = vmatpush.msrb.mxu2 %v1788_v53  ;;  %864 = vmatpush.msrb.mxu3 %v1927_v0 }
  0x3c   : > { %707 = vmatpush.msrb.mxu0 %v2154_v37  ;;  %758 = vmatpush.msrb.mxu1 %v1605_v3  ;;  %v1949_v3 = vand.u32 4294901760, %v874_v49  ;;  %v2156_v37 = vand.u32 4294901760, %v1657_v29  ;;  %v2157_v49 = vand.u32 4294901760, %v1683_v40  ;;  %v1967_v29 = vand.u32 4294901760, %v886_v2 }
  0x3d   : > { %815 = vmatpush.msrb.mxu2 %v1804_v12  ;;  %870 = vmatpush.msrb.mxu3 %v1939_v18  ;;  %v825_v40 = vsub.f32 %v798_v19, %v1960_v15 }
  0x3e   : > { %711 = vmatpush.msrb.mxu0 %v2155_v36  ;;  %760 = vmatpush.msrb.mxu1 %v1607_v4  ;;  %v1958_v4 = vand.u32 4294901760, %v880_v60  ;;  %v489_v60 = vand.u32 4294901760, %v488_v20  ;;  %v2161_v36 = vand.u32 4294901760, %v1741_v1 }
  0x3f   : > { %817 = vmatpush.msrb.mxu2 %v1821_v21  ;;  %876 = vmatpush.msrb.mxu3 %v1949_v3 }
  0x40   : > { %715 = vmatpush.msrb.mxu0 %v2156_v37  ;;  %762 = vmatpush.msrb.mxu1 %v1609_v5  ;;  %v2158_v5 = vand.u32 4294901760, %v1696_v46  ;;  %v2160_v46 = vand.u32 4294901760, %v1727_v58  ;;  %v2165_v58 = vand.u32 4294901760, %v1793_v54 }
  0x41   : > { %819 = vmatpush.msrb.mxu2 %v1837_v51  ;;  %882 = vmatpush.msrb.mxu3 %v1958_v4 }
  0x42   : > { %719 = vmatpush.msrb.mxu0 %v2157_v49  ;;  %764 = vmatpush.msrb.mxu1 %v1614_v9  ;;  %v2159_v9 = vand.u32 4294901760, %v1714_v52  ;;  %v2163_v52 = vand.u32 4294901760, %v1772_v39 }
  0x43   : > { %821 = vmatpush.msrb.mxu2 %v1859_v28  ;;  %888 = vmatpush.msrb.mxu3 %v1967_v29 }
  0x44   : > { %723 = vmatpush.msrb.mxu0 %v2158_v5  ;;  %766 = vmatpush.msrb.mxu1 %v1616_v10  ;;  %v826_v10 = vand.u32 4294901760, %v825_v40 }
  0x45   : > { %823 = vmatpush.msrb.mxu2 %v1875_v23  ;;  %490 = vmatmul.f32.vlgmr.msra.gmra.mxu0 %v489_v60 }
  0x46   : > { %727 = vmatpush.msrb.mxu0 %v2159_v9  ;;  %768 = vmatpush.msrb.mxu1 %v1618_v11  ;;  %v2162_v11 = vand.u32 4294901760, %v1757_v26 }
  0x47   : > { %645 = vmatmul.f32.vlgmr.msra.gmra.mxu2 %v486_v16  ;;  %684 = vmatmul.f32.vlgmr.msra.gmra.mxu3 %v487_v61 }
  0x48   : > { %731 = vmatpush.msrb.mxu0 %v2160_v46  ;;  %770 = vmatpush.msrb.mxu1 %v1633_v17  ;;  %v827_v17 = vsub.f32 %v825_v40, %v826_v10 }
  0x49   : > { %904 = vmatpush.msra.mxu2 %v1780_v42  ;;  %941 = vmatpush.msra.mxu3 %v1749_v8 }
  0x4a   : > { %735 = vmatpush.msrb.mxu0 %v2161_v36  ;;  %772 = vmatpush.msrb.mxu1 %v1650_v25  ;;  %v2164_v25 = vand.u32 4294901760, %v1777_v41 }
  0x4b   : > { %907 = vmatpush.msra.mxu2 %v1796_v55  ;;  %591 = vmatmul.f32.vlgmr.msra.gmra.mxu1 %v1891_v14 }
  0x4c   : > { %739 = vmatpush.msrb.mxu0 %v2162_v11  ;;  %774 = vmatpush.msrb.mxu1 %v1670_v33  ;;  %v828_v33 = vand.u32 4294901760, %v827_v17 }
  0x4d   : > { %910 = vmatpush.msra.mxu2 %v1819_v38  ;;  %943 = vmatpush.msra.mxu3 %v1763_v31 }
  0x4e   : > { %743 = vmatpush.msrb.mxu0 %v2163_v52  ;;  %776 = vmatpush.msrb.mxu1 %v1673_v34  ;;  %v1039_v34 = vld [vmem:[%s408_s22] sm:$0x1] }
  0x4f   : > { %913 = vmatpush.msra.mxu2 %v1835_v57  ;;  %945 = vmatpush.msra.mxu3 %v1788_v53 }
  0x50   : > { %747 = vmatpush.msrb.mxu0 %v2164_v25  ;;  %778 = vmatpush.msrb.mxu1 %v1692_v44  ;;  %v2166_v44 = vld [vmem:[#allocation2_spill] sm:$0xff] }
  0x51   : > { %916 = vmatpush.msra.mxu2 %v1857_v35  ;;  %947 = vmatpush.msra.mxu3 %v1804_v12 }
  0x52   : > { %751 = vmatpush.msrb.mxu0 %v2165_v58  ;;  %780 = vmatpush.msrb.mxu1 %v1710_v50  ;;  %v1041_v50 = vsel %vm796_vm0, %v1039_v34, 0 }
  0x53   : > { %919 = vmatpush.msra.mxu2 %v1873_v24  ;;  %949 = vmatpush.msra.mxu3 %v1821_v21 }
  0x54   : > { %753 = vmatmul.f32.vlgmr.msrb.gmra.mxu0 %v1891_v14  ;;  %829 = vmatmul.f32.vlgmr.msrb.gmra.mxu2 %v828_v33 }
  0x55   : > { %782 = vmatpush.msrb.mxu1 %v1723_v56  ;;  %922 = vmatpush.msra.mxu2 %v1889_v32  ;;  %v2167_v56 = vld [vmem:[#allocation3_spill] sm:$0xff] }
  0x56   : > { %951 = vmatpush.msra.mxu3 %v1837_v51  ;;  %974 = vmatpush.msra.mxu0 %v1810_v6 }
  0x57   : > { %890 = vmatmul.f32.vlgmr.msrb.gmra.mxu3 %v1960_v15  ;;  %784 = vmatpush.msrb.mxu1 %v1737_v63  ;;  %v2032_v63 = vand.u32 4294901760, %v1041_v50 }
  0x58   : > { %925 = vmatpush.msra.mxu2 %v1905_v48  ;;  %953 = vmatpush.msra.mxu3 %v1859_v28 }
  0x59   : > { %786 = vmatpush.msrb.mxu1 %v1747_v7  ;;  %978 = vmatpush.msra.mxu0 %v2166_v44  ;;  %v1068_v1 = vsub.f32 %v1041_v50, %v2032_v63 }
  0x5a   : > { %1052 = vmatpush.msrb.mxu2 %v1749_v8  ;;  %955 = vmatpush.msra.mxu3 %v1875_v23 }
  0x5b   : > { %788 = vmatpush.msrb.mxu1 %v1761_v30  ;;  %982 = vmatpush.msra.mxu0 %v2167_v56  ;;  %v1069_v7 = vand.u32 4294901760, %v1068_v1 }
  0x5c   : > { %1054 = vmatpush.msrb.mxu2 %v1763_v31  ;;  %1089 = vmatpush.msrb.mxu3 %v1880_v47 }
  0x5d   : > { %790 = vmatmul.f32.vlgmr.msrb.gmra.mxu1 %v1891_v14  ;;  %928 = vmatmul.f32.vlgmr.msra.gmra.mxu2 %v825_v40  ;;  %v1070_v26 = vsub.f32 %v1068_v1, %v1069_v7 }
  0x5e   : > { %1017 = vmatpush.msra.mxu1 %v1749_v8  ;;  %1056 = vmatpush.msrb.mxu2 %v1788_v53 }
  0x5f   : > { %1095 = vmatpush.msrb.mxu3 %v1896_v62  ;;  %986 = vmatpush.msra.mxu0 %v1870_v59  ;;  %v1071_v30 = vand.u32 4294901760, %v1070_v26 }
  0x60   : > { %959 = vmatmul.f32.vlgmr.msra.gmra.mxu3 %v826_v10  ;;  %1019 = vmatpush.msra.mxu1 %v1763_v31 }
  0x61   : > { %1058 = vmatpush.msrb.mxu2 %v1804_v12  ;;  %1101 = vmatpush.msrb.mxu3 %v1915_v27 }
  0x62   : > { %990 = vmatpush.msra.mxu0 %v1886_v13  ;;  %1021 = vmatpush.msra.mxu1 %v1788_v53 }
  0x63   : > { %1060 = vmatpush.msrb.mxu2 %v1821_v21  ;;  %1107 = vmatpush.msrb.mxu3 %v1927_v0 }
  0x64   : > { %994 = vmatpush.msra.mxu0 %v1902_v45  ;;  %1023 = vmatpush.msra.mxu1 %v1804_v12 }
  0x65   : > { %1062 = vmatpush.msrb.mxu2 %v1837_v51  ;;  %1113 = vmatpush.msrb.mxu3 %v1939_v18 }
  0x66   : > { %998 = vmatpush.msra.mxu0 %v1920_v43  ;;  %1025 = vmatpush.msra.mxu1 %v1821_v21 }
  0x67   : > { %1064 = vmatpush.msrb.mxu2 %v1859_v28  ;;  %1119 = vmatpush.msrb.mxu3 %v1949_v3 }
  0x68   : > { %1002 = vmatpush.msra.mxu0 %v1932_v22  ;;  %1027 = vmatpush.msra.mxu1 %v1837_v51 }
  0x69   : > { %1004 = vmatmul.f32.vlgmr.msra.gmra.mxu0 %v1960_v15  ;;  %1066 = vmatpush.msrb.mxu2 %v1875_v23 }
  0x6a   : > { %1125 = vmatpush.msrb.mxu3 %v1958_v4  ;;  %1029 = vmatpush.msra.mxu1 %v1859_v28 }
  0x6b   : > { %1217 = vmatpush.msra.mxu2 %v1810_v6  ;;  %1147 = vmatpush.msrb.mxu0 %v1780_v42 }
  0x6c   : > { %1131 = vmatpush.msrb.mxu3 %v1967_v29  ;;  %1031 = vmatpush.msra.mxu1 %v1875_v23 }
  0x6d   : > { %1221 = vmatpush.msra.mxu2 %v2166_v44  ;;  %1033 = vmatmul.f32.vlgmr.msra.gmra.mxu1 %v1960_v15 }
  0x6e   : > { %1260 = vmatpush.msra.mxu3 %v1749_v8  ;;  %1150 = vmatpush.msrb.mxu0 %v1796_v55 }
  0x6f   : > { %1184 = vmatpush.msrb.mxu1 %v1749_v8  ;;  %1225 = vmatpush.msra.mxu2 %v2167_v56 }
  0x70   : > { %1262 = vmatpush.msra.mxu3 %v1763_v31  ;;  %1153 = vmatpush.msrb.mxu0 %v1819_v38 }
  0x71   : > { %1186 = vmatpush.msrb.mxu1 %v1763_v31  ;;  %1229 = vmatpush.msra.mxu2 %v1870_v59 }
  0x72   : > { %1264 = vmatpush.msra.mxu3 %v1788_v53  ;;  %1072 = vmatmul.f32.vlgmr.msrb.gmra.mxu2 %v1071_v30 }
  0x73   : > { %1156 = vmatpush.msrb.mxu0 %v1835_v57  ;;  %1188 = vmatpush.msrb.mxu1 %v1788_v53 }
  0x74   : > { %1233 = vmatpush.msra.mxu2 %v1886_v13  ;;  %1266 = vmatpush.msra.mxu3 %v1804_v12 }
  0x75   : > { %1133 = vmatmul.f32.vlgmr.msrb.gmra.mxu3 %v2032_v63  ;;  %1159 = vmatpush.msrb.mxu0 %v1857_v35 }
  0x76   : > { %1190 = vmatpush.msrb.mxu1 %v1804_v12  ;;  %1237 = vmatpush.msra.mxu2 %v1902_v45 }
  0x77   : > { %1268 = vmatpush.msra.mxu3 %v1821_v21  ;;  %1162 = vmatpush.msrb.mxu0 %v1873_v24 }
  0x78   : > { %1192 = vmatpush.msrb.mxu1 %v1821_v21  ;;  %1241 = vmatpush.msra.mxu2 %v1920_v43 }
  0x79   : > { %1270 = vmatpush.msra.mxu3 %v1837_v51  ;;  %1165 = vmatpush.msrb.mxu0 %v1889_v32 }
  0x7a   : > { %1194 = vmatpush.msrb.mxu1 %v1837_v51  ;;  %1245 = vmatpush.msra.mxu2 %v1932_v22 }
  0x7b   : > { %1272 = vmatpush.msra.mxu3 %v1859_v28  ;;  %1247 = vmatmul.f32.vlgmr.msra.gmra.mxu2 %v2032_v63 }
  0x7c   : > { %1168 = vmatpush.msrb.mxu0 %v1905_v48  ;;  %1196 = vmatpush.msrb.mxu1 %v1859_v28 }
  0x7d   : > { %1274 = vmatpush.msra.mxu3 %v1875_v23  ;;  %1171 = vmatmul.f32.vlgmr.msrb.gmra.mxu0 %v1068_v1 }
  0x7e   : > { %1276 = vmatmul.f32.vlgmr.msra.gmra.mxu3 %v2032_v63  ;;  %1198 = vmatpush.msrb.mxu1 %v1875_v23 }
  0x7f   : > { %1202 = vmatmul.f32.vlgmr.msrb.gmra.mxu1 %v1069_v7 }
  0xc2   : > { %v491_v24 = vpop.f32.mrf.mxu0 }
  0xc3   : > { %v492_v35 = vadd.f32 128.0, %v491_v24 }
  0xc8   : > { %v592_v45 = vpop.f32.mrf.mxu1 }
  0xc9   : > { %v593_v51 = vadd.f32 %v592_v45, %v492_v35 }
  0xca   : > { %v646_v57 = vpop.f32.mrf.mxu2  ;;  %v685_v21 = vpop.f32.mrf.mxu3 }
  0xcb   : > { %v647_v8 = vadd.f32 %v646_v57, %v593_v51 }
  0xcd   : > { %v686_v31 = vadd.f32 %v685_v21, %v647_v8 }
  0xd1   : > { %v754_v38 = vpop.f32.mrf.mxu0 }
  0xd2   : > { %v755_v39 = vadd.f32 %v754_v38, %v686_v31 }
  0xd7   : > { %v830_v28 = vpop.f32.mrf.mxu2 }
  0xd8   : > { %v831_v41 = vadd.f32 128.0, %v830_v28 }
  0xda   : > { %v791_v23 = vpop.f32.mrf.mxu1  ;;  %v891_v42 = vpop.f32.mrf.mxu3 }
  0xdb   : > { %v792_v53 = vadd.f32 %v791_v23, %v755_v39  ;;  %v892_v54 = vadd.f32 %v891_v42, %v831_v41 }
  0xdd   : > { %794 = vst [vmem:[%s415_s29] sm:$0x3] %v792_v53 }
  0xe0   : > { %v929_v55 = vpop.f32.mrf.mxu2 }
  0xe1   : > { %v930_v12 = vadd.f32 %v929_v55, %v892_v54 }
  0xe3   : > { %v960_v6 = vpop.f32.mrf.mxu3 }
  0xe4   : > { %v961_v47 = vadd.f32 %v960_v6, %v930_v12 }
  0xe6   : > { %v1005_v59 = vpop.f32.mrf.mxu0 }
  0xe7   : > { %v1006_v13 = vadd.f32 %v1005_v59, %v961_v47 }
  0xea   : > { %v1034_v32 = vpop.f32.mrf.mxu1 }
  0xeb   : > { %v1035_v14 = vadd.f32 %v1034_v32, %v1006_v13 }
  0xed   : > { %1038 = vst.msk [vmem:[%s421_s9] sm:$0x1] %vm1037_vm1, %v1035_v14 }
  0xf5   : > { %v1073_v62 = vpop.f32.mrf.mxu2 }
  0xf6   : > { %v1074_v48 = vadd.f32 128.0, %v1073_v62 }
  0xf8   : > { %v1134_v27 = vpop.f32.mrf.mxu3 }
  0xf9   : > { %v1135_v43 = vadd.f32 %v1134_v27, %v1074_v48 }
  0xfa   : > { %v1172_v16 = vpop.f32.mrf.mxu0 }
  0xfb   : > { %v1173_v0 = vadd.f32 %v1172_v16, %v1135_v43 }
  0xfc   : > { %v1203_v22 = vpop.f32.mrf.mxu1 }
  0xfd   : > { %v1204_v18 = vadd.f32 %v1203_v22, %v1173_v0 }
  0xfe   : > { %v1248_v61 = vpop.f32.mrf.mxu2 }
  0xff   : > { %v1249_v19 = vadd.f32 %v1248_v61, %v1204_v18 }
 0x101   : > { %v1277_v3 = vpop.f32.mrf.mxu3 }
 0x102   : > { %v1278_v2 = vadd.f32 %v1277_v3, %v1249_v19 }
 0x104   : > { %1280 = vst.msk [vmem:[%s427_s12] sm:$0x1] %vm1037_vm1, %v1278_v2 }
 0x105 PF: > { %s18_s26 = sadd.s32 1, %s1534_s26   ;;  %s2168_s24 = smov %s1530_s25 }
 0x106   : > { %p15_p5 = scmp.ge.s32.totalorder %s18_s26, 4   ;;  %s2169_s25 = smov %s2171_s27 }
 0x108   :  { %17 = sbr.rel (!%p15_p5) target bundleno = 2 (0x2), region = 106 }

// kernel: _forward_impl.3
= control target key start
LH: loop header
LB: loop body
LE: loop exit
PB: predicated region body
PF: predicated region fallthrough
CT: control target
= control target key end

     0   :  { %10 = vsyncpa [#allocation3], 0  ;;  %s1641_s0 = inlined_call_operand.vmem [shape: f32[2,16,16], index: 0, kind: input, shape index: {}]   ;;  %s1642_s1 = inlined_call_operand.vmem [shape: f32[2,8,8], index: 1, kind: input, shape index: {}]   ;;  %s1643_s2 = inlined_call_operand.vmem [shape: f32[2,8,8], index: 2, kind: input, shape index: {}]   ;;  %s1644_s3 = inlined_call_operand.vmem [shape: f32[16,8], index: 3, kind: input, shape index: {}]   ;;  %s1645_s4 = inlined_call_operand.vmem [shape: f32[8,16], index: 4, kind: input, shape index: {}]   ;;  %s1646_s5 = inlined_call_operand.hbm [shape: f32[2,3,16,16], index: 5, kind: output, shape index: {}]  }
   0x1   :  { %12 = vsyncpa [#allocation3 + $0x1], 0  ;;  %s1410_s18 = smov 0   ;;  %s1412_s19 = smov 0  }
   0x2   :  { %s1414_s20 = smov 0   ;;  %s1416_s21 = smov 0  }
   0x3   :  { %s1418_s22 = smov 0   ;;  %s1420_s23 = smov 0  }
   0x4 LB: > { %s1218_s24 = sadd.s32 4294967295, %s1376_s23   ;;  %s1219_s25 = sadd.s32 4294967294, %s1376_s23   ;;  %s1376_s23 = sphi %s1420_s23, %s18_s23   ;;  %s1372_s22 = sphi %s1418_s22, %s1653_s22   ;;  %s1368_s21 = sphi %s1416_s21, %s1652_s21   ;;  %s1364_s20 = sphi %s1414_s20, %s1651_s20   ;;  %s1360_s19 = sphi %s1412_s19, %s1650_s19   ;;  %s1356_s18 = sphi %s1410_s18, %s1649_s18  }
   0x5   : > { %s30_s26 = sadd.s32 1, %s1372_s22  ;;  %s165_s27 = sadd.s32 1, %s1364_s20 }
   0x6   : > { %p32_p0 = scmp.ge.s32.totalorder %s30_s26, 2  ;;  %p175_p1 = scmp.ne.s32.totalorder %s1364_s20, %s1360_s19 }
   0x7   : > { %p176_p2 = scmp.eq.s32.totalorder %s1218_s24, 1  ;;  %p181_p3 = scmp.ne.s32.totalorder %s1360_s19, %s1356_s18 }
   0x8   : > { %s1655_s26 = smov (%p32_p0, %s30_s26), 0  ;;  %p182_p5 = scmp.eq.s32.totalorder %s1219_s25, 1 }
   0x9   : > { %p1450_p4 = por %p176_p2, %p175_p1  ;;  %s160_s29 = ssub.s32 %s1372_s22, %s1655_s26 }
   0xa   : > { %p1222_p6 = scmp.ge.s32.totalorder %s1376_s23, 1  ;;  %p163_p7 = scmp.eq.s32.totalorder %s160_s29, 0 }
   0xb   : > { %p1457_p8 = por %p182_p5, %p181_p3  ;;  %p239_p9 = scmp.lt.s32.totalorder %s1376_s23, 3 }
   0xc   : > { %s1463_s6 = scalar_select %p163_p7, %s1364_s20, %s165_s27  }
   0xd   : > { %p240_p10 = pnand %p1222_p6, %p239_p9 }
   0xe   : > { %p286_p11 = scmp.lt.s32.totalorder (!%p240_p10), %s1368_s21, 1  ;;  %s282_s10 = sand.u32 (!%p240_p10), 1, %s1360_s19  }
   0xf   : > { %243 = sbr.rel (%p240_p10) target bundleno = 551 (0x227), region = 40  ;;  %s1092_s24 = scalar_lea.sflag (!%p240_p10), [#allocation3], %s282_s10 }
  0x10   : > { %s1240_s13 = smul.u32 (!%p240_p10), 48, %s1368_s21  ;;  %s1318_s8 = scalar_lea.hbm (!%p240_p10), %s1646_s5, 96 }
  0x12   : > { %s1105_s16 = scalar_lea.hbm (!%p240_p10), %s1646_s5, %s1240_s13 }
  0x13   : > { %s1108_s17 = sshll.u32 (!%p240_p10), %s1105_s16, 4  ;;  %s1109_s17 = int_to_ptr.hbm [resolvable:$true] %s1108_s17 }
  0x14   : > { %v312_v0 = vld [vmem:[%s1644_s3] sm:$0xff]  ;;  %vm316_vm0 = vcmask 64512   ;;  %v313_v1 = vld [vmem:[%s1644_s3 + $0x8] sm:$0xff]  ;;  %s1475_s11 = scalar_select %p286_p11, %s1368_s21, 1  ;;  %vm1070_vm1 = vcmask 130048  }
  0x15   : > { %v318_v2 = vsel %vm316_vm0, %v312_v0, 0  ;;  %v321_v3 = vsel %vm316_vm0, %v313_v1, 0  ;;  %v314_v20 = vld [vmem:[%s1645_s4] sm:$0xff]  ;;  %s1312_s25 = sshra.s32 %s1109_s17, 4  ;;  %s1313_s25 = int_to_ptr.hbm [resolvable:$true] %s1312_s25 }
  0x16   : > { %v1477_v4 = vand.u32 4294901760, %v318_v2  ;;  %v1479_v5 = vand.u32 4294901760, %v321_v3  ;;  %s1225_s12 = sshll.u32 %s1475_s11, 3  ;;  %v1522_v21 = vand.u32 4294901760, %v314_v20  ;;  %s1238_s29 = sshll.u32 %s1475_s11, 4 }
  0x17   : > { %s301_s15 = scalar_lea.vmem %s1642_s1, %s1225_s12  ;;  %s308_s27 = scalar_lea.vmem %s1643_s2, %s1225_s12 }
  0x18   : > { %v1483_v6 = vsub.f32 %v318_v2, %v1477_v4  ;;  %v1486_v7 = vsub.f32 %v321_v3, %v1479_v5  ;;  %v315_v8 = vld [vmem:[%s301_s15] sm:$0xff]  ;;  %v1526_v22 = vsub.f32 %v314_v20, %v1522_v21  ;;  %s293_s9 = scalar_lea.vmem %s1641_s0, %s1238_s29  ;;  %s1239_s11 = smul.u32 48, %s282_s10 }
  0x19   : > { %v338_v10 = vand.u32 4294901760, %v315_v8  ;;  %v685_v31 = vld [vmem:[%s308_s27] sm:$0xff]  ;;  %s1314_s27 = scalar_lea.hbm %s1313_s25, 48  ;;  %p1319_p1 = scmp.lt.s32.totalorder %s1313_s25, %s1646_s5 }
  0x1a   : > { %v1494_v9 = vand.u32 4294901760, %v1483_v6  ;;  %v1499_v12 = vand.u32 4294901760, %v1486_v7  ;;  %v1530_v23 = vand.u32 4294901760, %v1526_v22  ;;  %v701_v32 = vand.u32 4294901760, %v685_v31  ;;  %s1579_s12 = scalar_lea.vmem [#allocation2], %s1239_s11  ;;  %p1315_p12 = scmp.ne.s32.totalorder %s1313_s25, %s1314_s27 }
  0x1b   : > { %339 = vmatpush.msra.mxu0 %v338_v10  ;;  %v373_v13 = vsub.f32 %v315_v8, %v338_v10  ;;  %432 = vmatpush.msra.mxu3 %v338_v10  ;;  %s1106_s21 = sshll.u32 %s1579_s12, 4  ;;  %p1320_p2 = scmp.lt.s32.totalorder %s1318_s8, %s1314_s27  ;;  %s1107_s21 = int_to_ptr.vmem [resolvable:$true] %s1106_s21 }
  0x1c   : > { %v343_v11 = vsub.f32 %v1483_v6, %v1494_v9  ;;  %436 = vmatmul.f32.vlgmr.msra.gmra.mxu3 %v1494_v9  ;;  %v351_v16 = vsub.f32 %v1486_v7, %v1499_v12  ;;  %v558_v24 = vsub.f32 %v1526_v22, %v1530_v23  ;;  %v736_v36 = vsub.f32 %v685_v31, %v701_v32  ;;  %p1316_p13 = pnand %p1315_p12, %p1450_p4 }
  0x1d   : > { %404 = vmatpush.msra.mxu2 %v373_v13  ;;  %v374_v15 = vand.u32 4294901760, %v373_v13  ;;  %p1321_p3 = por %p1320_p2, %p1319_p1 }
  0x1e   : > { %v1501_v14 = vand.u32 4294901760, %v343_v11  ;;  %407 = vmatmul.f32.vlgmr.msra.gmra.mxu2 %v1483_v6  ;;  %v1508_v19 = vand.u32 4294901760, %v351_v16  ;;  %v559_v25 = vand.u32 4294901760, %v558_v24  ;;  %v737_v38 = vand.u32 4294901760, %v736_v36  ;;  %p1317_p0 = pneg %p1316_p13 }
  0x1f   : > { %464 = vmatpush.msrb.mxu0 %v374_v15  ;;  %v375_v17 = vsub.f32 %v373_v13, %v374_v15  ;;  %522 = vmatpush.msrb.mxu2 %v1522_v21 }
  0x20   : > { %345 = vmatmul.f32.vlgmr.msra.gmra.mxu0 %v1501_v14  ;;  %560 = vmatpush.msrb.mxu3 %v559_v25  ;;  %v738_v41 = vsub.f32 %v736_v36, %v737_v38  ;;  %p1322_p5 = pnand %p1321_p3, %p1317_p0 }
  0x21   : > { %v376_v18 = vand.u32 4294901760, %v375_v17  ;;  %587 = vmatpush.msra.mxu0 %v1526_v22  ;;  %647 = vmatpush.msra.mxu2 %v1530_v23 }
  0x22   : > { %673 = vmatpush.msra.mxu3 %v1522_v21  ;;  %v739_v44 = vand.u32 4294901760, %v738_v41 }
  0x23   : > { %377 = vmatpush.msra.mxu1 %v376_v18 }
  0x24   : > { %379 = vmatmul.f32.vlgmr.msra.gmra.mxu1 %v1477_v4  ;;  %442 = vmatmul.f32.gmra.mxu3 %v1499_v12 }
  0x25   : > { %490 = vmatpush.msrb.mxu1 %v338_v10 }
  0x26   : > { %412 = vmatmul.f32.gmra.mxu2 %v1486_v7 }
  0x27   : > { %615 = vmatpush.msra.mxu1 %v1522_v21 }
  0x28   : > { %353 = vmatmul.f32.gmra.mxu0 %v1508_v19 }
  0x2c   : > { %383 = vmatmul.f32.gmra.mxu1 %v1479_v5 }
  0x30   : > { %466 = vmatmul.f32.vlgmr.msrb.gmra.mxu0 %v1477_v4 }
  0x31   : > { %702 = vmatpush.msrb.mxu0 %v701_v32 }
  0x34   : > { %492 = vmatmul.f32.vlgmr.msrb.gmra.mxu1 %v1477_v4 }
  0x35   : > { %740 = vmatpush.msrb.mxu1 %v739_v44 }
  0x38   : > { %470 = vmatmul.f32.gmra.mxu0 %v1479_v5 }
  0x3c   : > { %496 = vmatmul.f32.gmra.mxu1 %v1479_v5 }
  0x9d   : > { %v346_v26 = vpop.f32.mrf.mxu0 }
  0x9f   : > { %v437_v33 = vpop.f32.mrf.mxu3 }
  0xa1   : > { %v380_v27 = vpop.f32.mrf.mxu1  ;;  %v408_v29 = vpop.f32.mrf.mxu2 }
  0xa2   : > { %v381_v30 = vadd.f32 %v380_v27, %v346_v26 }
  0xa4   : > { %v409_v35 = vadd.f32 %v408_v29, %v381_v30 }
  0xa5   : > { %v354_v28 = vpop.f32.mrf.mxu0 }
  0xa6   : > { %v438_v39 = vadd.f32 %v437_v33, %v409_v35  ;;  %v1576_v35 = vld [vmem:[%s293_s9 + $0x8] sm:$0xff] }
  0xa7   : > { %v443_v48 = vpop.f32.mrf.mxu3 }
  0xa9   : > { %v384_v34 = vpop.f32.mrf.mxu1  ;;  %v413_v42 = vpop.f32.mrf.mxu2 }
  0xaa   : > { %v385_v40 = vadd.f32 %v384_v34, %v354_v28 }
  0xac   : > { %v414_v46 = vadd.f32 %v413_v42, %v385_v40 }
  0xad   : > { %v467_v37 = vpop.f32.mrf.mxu0 }
  0xae   : > { %v468_v43 = vadd.f32 %v467_v37, %v438_v39  ;;  %v444_v52 = vadd.f32 %v443_v48, %v414_v46 }
  0xb1   : > { %v493_v45 = vpop.f32.mrf.mxu1 }
  0xb2   : > { %v494_v47 = vadd.f32 %v493_v45, %v468_v43 }
  0xb4   : > { %v501_v49 = vsel %vm316_vm0, %v494_v47, 0 }
  0xb5   : > { %v523_v50 = vand.u32 4294901760, %v501_v49  ;;  %v471_v51 = vpop.f32.mrf.mxu0 }
  0xb6   : > { %v472_v54 = vadd.f32 %v471_v51, %v444_v52 }
  0xb7   : > { %v524_v53 = vsub.f32 %v501_v49, %v523_v50  ;;  %562 = vmatmul.f32.vlgmr.msrb.gmra.mxu3 %v523_v50 }
  0xb8   : > { %795 = vmatpush.msrb.mxu3 %v701_v32 }
  0xb9   : > { %v497_v55 = vpop.f32.mrf.mxu1  ;;  %590 = vmatmul.f32.vlgmr.msra.gmra.mxu0 %v524_v53  ;;  %v525_v56 = vand.u32 4294901760, %v524_v53 }
  0xba   : > { %v498_v57 = vadd.f32 %v497_v55, %v472_v54  ;;  %827 = vmatpush.msra.mxu0 %v737_v38 }
  0xbb   : > { %619 = vmatmul.f32.vlgmr.msra.gmra.mxu1 %v525_v56  ;;  %v526_v58 = vsub.f32 %v524_v53, %v525_v56 }
  0xbc   : > { %v504_v59 = vsel %vm316_vm0, %v498_v57, 0  ;;  %853 = vmatpush.msra.mxu1 %v701_v32 }
  0xbd   : > { %v531_v60 = vand.u32 4294901760, %v504_v59  ;;  %v527_v61 = vand.u32 4294901760, %v526_v58 }
  0xbf   : > { %v532_v62 = vsub.f32 %v504_v59, %v531_v60  ;;  %528 = vmatmul.f32.vlgmr.msrb.gmra.mxu2 %v527_v61  ;;  %566 = vmatmul.f32.gmra.mxu3 %v531_v60 }
  0xc0   : > { %767 = vmatpush.msrb.mxu2 %v736_v36 }
  0xc1   : > { %595 = vmatmul.f32.gmra.mxu0 %v532_v62  ;;  %v533_v63 = vand.u32 4294901760, %v532_v62 }
  0xc3   : > { %625 = vmatmul.f32.gmra.mxu1 %v533_v63  ;;  %v534_v0 = vsub.f32 %v532_v62, %v533_v63 }
  0xc5   : > { %v535_v1 = vand.u32 4294901760, %v534_v0 }
  0xc7   : > { %536 = vmatmul.f32.gmra.mxu2 %v535_v1  ;;  %675 = vmatmul.f32.vlgmr.msra.gmra.mxu3 %v523_v50 }
  0xc8   : > { %923 = vmatpush.msra.mxu3 %v559_v25 }
  0xc9   : > { %708 = vmatmul.f32.vlgmr.msrb.gmra.mxu0 %v1501_v14 }
  0xca   : > { %950 = vmatpush.msrb.mxu0 %v1526_v22  ;;  %v1567_v22 = vld [vmem:[%s293_s9] sm:$0xff] }
  0xcb   : > { %742 = vmatmul.f32.vlgmr.msrb.gmra.mxu1 %v1477_v4 }
  0xcc   : > { %978 = vmatpush.msrb.mxu1 %v1522_v21 }
  0xcf   : > { %649 = vmatmul.f32.vlgmr.msra.gmra.mxu2 %v523_v50  ;;  %679 = vmatmul.f32.gmra.mxu3 %v531_v60 }
  0xd0   : > { %885 = vmatpush.msra.mxu2 %v1522_v21 }
  0xd1   : > { %716 = vmatmul.f32.gmra.mxu0 %v1508_v19 }
  0xd3   : > { %746 = vmatmul.f32.gmra.mxu1 %v1479_v5 }
  0xd7   : > { %653 = vmatmul.f32.gmra.mxu2 %v531_v60  ;;  %799 = vmatmul.f32.vlgmr.msrb.gmra.mxu3 %v1494_v9 }
  0xd8   : > { %1036 = vmatpush.msrb.mxu3 %v1522_v21 }
  0xd9   : > { %829 = vmatmul.f32.vlgmr.msra.gmra.mxu0 %v1477_v4 }
  0xdb   : > { %855 = vmatmul.f32.vlgmr.msra.gmra.mxu1 %v1477_v4 }
  0xdf   : > { %770 = vmatmul.f32.vlgmr.msrb.gmra.mxu2 %v1483_v6  ;;  %805 = vmatmul.f32.gmra.mxu3 %v1499_v12 }
  0xe0   : > { %1010 = vmatpush.msrb.mxu2 %v1530_v23 }
  0xe1   : > { %833 = vmatmul.f32.gmra.mxu0 %v1479_v5 }
  0xe3   : > { %859 = vmatmul.f32.gmra.mxu1 %v1479_v5 }
  0xe7   : > { %775 = vmatmul.f32.gmra.mxu2 %v1486_v7 }
 0x136   : > { %v591_v3 = vpop.f32.mrf.mxu0 }
 0x138   : > { %v620_v8 = vpop.f32.mrf.mxu1 }
 0x13a   : > { %v563_v2 = vpop.f32.mrf.mxu3 }
 0x13e   : > { %v596_v11 = vpop.f32.mrf.mxu0 }
 0x140   : > { %v626_v13 = vpop.f32.mrf.mxu1 }
 0x142   : > { %v529_v9 = vpop.f32.mrf.mxu2  ;;  %v567_v10 = vpop.f32.mrf.mxu3 }
 0x143   : > { %v564_v4 = vadd.f32 %v563_v2, %v529_v9 }
 0x145   : > { %v592_v14 = vadd.f32 %v591_v3, %v564_v4 }
 0x146   : > { %v709_v15 = vpop.f32.mrf.mxu0 }
 0x147   : > { %v621_v17 = vadd.f32 %v620_v8, %v592_v14 }
 0x148   : > { %v743_v18 = vpop.f32.mrf.mxu1 }
 0x149   : > { %v744_v38 = vadd.f32 %v743_v18, %v709_v15 }
 0x14a   : > { %v537_v6 = vpop.f32.mrf.mxu2  ;;  %v676_v12 = vpop.f32.mrf.mxu3 }
 0x14b   : > { %v568_v16 = vadd.f32 %v567_v10, %v537_v6 }
 0x14d   : > { %v597_v19 = vadd.f32 %v596_v11, %v568_v16 }
 0x14e   : > { %v717_v24 = vpop.f32.mrf.mxu0 }
 0x14f   : > { %v627_v26 = vadd.f32 %v626_v13, %v597_v19 }
 0x150   : > { %v747_v30 = vpop.f32.mrf.mxu1 }
 0x151   : > { %v748_v50 = vadd.f32 %v747_v30, %v717_v24 }
 0x152   : > { %v650_v5 = vpop.f32.mrf.mxu2  ;;  %v680_v23 = vpop.f32.mrf.mxu3 }
 0x153   : > { %v651_v7 = vadd.f32 %v650_v5, %v621_v17 }
 0x155   : > { %v677_v20 = vadd.f32 %v676_v12, %v651_v7 }
 0x156   : > { %v830_v41 = vpop.f32.mrf.mxu0 }
 0x157   : > { %v1565_v21 = vadd.f32 -128.0, %v677_v20 }
 0x158   : > { %v856_v44 = vpop.f32.mrf.mxu1 }
 0x159   : > { %v1060_v25 = vmul.f32 1.772, %v1565_v21  ;;  %v1052_v24 = vmul.f32 0.344136, %v1565_v21 }
 0x15a   : > { %v654_v27 = vpop.f32.mrf.mxu2  ;;  %v800_v36 = vpop.f32.mrf.mxu3 }
 0x15b   : > { %v1062_v28 = vadd.f32 %v1060_v25, %v1567_v22  ;;  %v655_v29 = vadd.f32 %v654_v27, %v627_v26 }
 0x15d   : > { %v1082_v31 = vmax.f32 %v1062_v28, 0.0  ;;  %v681_v32 = vadd.f32 %v680_v23, %v655_v29  ;;  %v1054_v29 = vsub.f32 %v1567_v22, %v1052_v24 }
 0x15e   : > { %v834_v57 = vpop.f32.mrf.mxu0 }
 0x15f   : > { %v1084_v33 = vmin.f32 %v1082_v31, 255.0  ;;  %v1574_v34 = vadd.f32 -128.0, %v681_v32 }
 0x160   : > { %v860_v60 = vpop.f32.mrf.mxu1 }
 0x161   : > { %v1086_v37 = vmul.f32 0.003921569, %v1084_v33  ;;  %v1061_v39 = vmul.f32 1.772, %v1574_v34 }
 0x162   : > { %v771_v40 = vpop.f32.mrf.mxu2  ;;  %v806_v53 = vpop.f32.mrf.mxu3 }
 0x163   : > { %1233 = vst.msk [vmem:[%s1579_s12 + $0x20] sm:$0xff] %vm1070_vm1, %v1086_v37  ;;  %v1063_v42 = vadd.f32 %v1061_v39, %v1576_v35  ;;  %v772_v43 = vadd.f32 %v771_v40, %v744_v38 }
 0x165   : > { %v1083_v45 = vmax.f32 %v1063_v42, 0.0  ;;  %v801_v46 = vadd.f32 %v800_v36, %v772_v43  ;;  %v1053_v42 = vmul.f32 0.344136, %v1574_v34 }
 0x167   : > { %v1085_v47 = vmin.f32 %v1083_v45, 255.0  ;;  %v831_v48 = vadd.f32 %v830_v41, %v801_v46 }
 0x169   : > { %v1087_v49 = vmul.f32 0.003921569, %v1085_v47  ;;  %v857_v51 = vadd.f32 %v856_v44, %v831_v48 }
 0x16a   : > { %v776_v52 = vpop.f32.mrf.mxu2 }
 0x16b   : > { %1234 = vst.msk [vmem:[%s1579_s12 + $0x28] sm:$0xff] %vm1070_vm1, %v1087_v49  ;;  %v864_v54 = vsel %vm316_vm0, %v857_v51, 0  ;;  %v777_v55 = vadd.f32 %v776_v52, %v748_v50 }
 0x16c   : > { %v886_v56 = vand.u32 4294901760, %v864_v54 }
 0x16d   : > { %v807_v58 = vadd.f32 %v806_v53, %v777_v55 }
 0x16e   : > { %v887_v59 = vsub.f32 %v864_v54, %v886_v56  ;;  %925 = vmatmul.f32.vlgmr.msra.gmra.mxu3 %v886_v56 }
 0x16f   : > { %v835_v61 = vadd.f32 %v834_v57, %v807_v58 }
 0x170   : > { %953 = vmatmul.f32.vlgmr.msrb.gmra.mxu0 %v887_v59  ;;  %v888_v62 = vand.u32 4294901760, %v887_v59 }
 0x171   : > { %v861_v63 = vadd.f32 %v860_v60, %v835_v61 }
 0x172   : > { %982 = vmatmul.f32.vlgmr.msrb.gmra.mxu1 %v888_v62  ;;  %v889_v0 = vsub.f32 %v887_v59, %v888_v62 }
 0x173   : > { %v867_v1 = vsel %vm316_vm0, %v861_v63, 0 }
 0x174   : > { %v894_v2 = vand.u32 4294901760, %v867_v1  ;;  %v890_v3 = vand.u32 4294901760, %v889_v0 }
 0x176   : > { %v895_v8 = vsub.f32 %v867_v1, %v894_v2  ;;  %891 = vmatmul.f32.vlgmr.msra.gmra.mxu2 %v890_v3  ;;  %929 = vmatmul.f32.gmra.mxu3 %v894_v2 }
 0x178   : > { %958 = vmatmul.f32.gmra.mxu0 %v895_v8  ;;  %v896_v9 = vand.u32 4294901760, %v895_v8 }
 0x17a   : > { %988 = vmatmul.f32.gmra.mxu1 %v896_v9  ;;  %v897_v10 = vsub.f32 %v895_v8, %v896_v9 }
 0x17c   : > { %v898_v11 = vand.u32 4294901760, %v897_v10 }
 0x17e   : > { %899 = vmatmul.f32.gmra.mxu2 %v898_v11  ;;  %1038 = vmatmul.f32.vlgmr.msrb.gmra.mxu3 %v886_v56 }
 0x186   : > { %1012 = vmatmul.f32.vlgmr.msrb.gmra.mxu2 %v886_v56  ;;  %1042 = vmatmul.f32.gmra.mxu3 %v894_v2 }
 0x18e   : > { %1016 = vmatmul.f32.gmra.mxu2 %v894_v2 }
 0x1ed   : > { %v954_v12 = vpop.f32.mrf.mxu0 }
 0x1ef   : > { %v983_v17 = vpop.f32.mrf.mxu1 }
 0x1f1   : > { %v926_v4 = vpop.f32.mrf.mxu3 }
 0x1f5   : > { %v959_v23 = vpop.f32.mrf.mxu0 }
 0x1f7   : > { %v989_v28 = vpop.f32.mrf.mxu1 }
 0x1f9   : > { %v892_v13 = vpop.f32.mrf.mxu2  ;;  %v930_v6 = vpop.f32.mrf.mxu3 }
 0x1fa   : > { %v927_v14 = vadd.f32 %v926_v4, %v892_v13 }
 0x1fc   : > { %v955_v16 = vadd.f32 %v954_v12, %v927_v14 }
 0x1fe   : > { %v984_v18 = vadd.f32 %v983_v17, %v955_v16 }
 0x201   : > { %v900_v15 = vpop.f32.mrf.mxu2  ;;  %v1039_v7 = vpop.f32.mrf.mxu3 }
 0x202   : > { %v931_v5 = vadd.f32 %v930_v6, %v900_v15 }
 0x204   : > { %v960_v25 = vadd.f32 %v959_v23, %v931_v5 }
 0x206   : > { %v990_v32 = vadd.f32 %v989_v28, %v960_v25 }
 0x209   : > { %v1013_v19 = vpop.f32.mrf.mxu2  ;;  %v1043_v39 = vpop.f32.mrf.mxu3 }
 0x20a   : > { %v1014_v20 = vadd.f32 %v1013_v19, %v984_v18 }
 0x20c   : > { %v1040_v26 = vadd.f32 %v1039_v7, %v1014_v20 }
 0x20e   : > { %v1229_v27 = vadd.f32 -128.0, %v1040_v26 }
 0x210   : > { %v1048_v30 = vmul.f32 1.402, %v1229_v27  ;;  %v1056_v31 = vmul.f32 0.714136, %v1229_v27 }
 0x211   : > { %v1017_v33 = vpop.f32.mrf.mxu2 }
 0x212   : > { %v1050_v36 = vadd.f32 %v1048_v30, %v1567_v22  ;;  %v1058_v37 = vsub.f32 %v1054_v29, %v1056_v31  ;;  %v1018_v38 = vadd.f32 %v1017_v33, %v990_v32  ;;  %v1055_v22 = vsub.f32 %v1576_v35, %v1053_v42 }
 0x214   : > { %v1064_v40 = vmax.f32 %v1050_v36, 0.0  ;;  %v1073_v21 = vmax.f32 %v1058_v37, 0.0  ;;  %v1044_v41 = vadd.f32 %v1043_v39, %v1018_v38 }
 0x216   : > { %v1066_v43 = vmin.f32 %v1064_v40, 255.0  ;;  %v1075_v44 = vmin.f32 %v1073_v21, 255.0  ;;  %v1230_v45 = vadd.f32 -128.0, %v1044_v41 }
 0x218   : > { %v1068_v46 = vmul.f32 0.003921569, %v1066_v43  ;;  %v1077_v47 = vmul.f32 0.003921569, %v1075_v44  ;;  %v1049_v48 = vmul.f32 1.402, %v1230_v45 }
 0x219   : > { %v1057_v49 = vmul.f32 0.714136, %v1230_v45 }
 0x21a   : > { %1071 = vst.msk [vmem:[%s1579_s12] sm:$0xff] %vm1070_vm1, %v1068_v46  ;;  %v1051_v50 = vadd.f32 %v1049_v48, %v1576_v35 }
 0x21b   : > { %1231 = vst.msk [vmem:[%s1579_s12 + $0x10] sm:$0xff] %vm1070_vm1, %v1077_v47  ;;  %v1059_v34 = vsub.f32 %v1055_v22, %v1057_v49 }
 0x21c   : > { %v1065_v51 = vmax.f32 %v1051_v50, 0.0 }
 0x21d   : > { %v1074_v52 = vmax.f32 %v1059_v34, 0.0 }
 0x21e   : > { %v1067_v53 = vmin.f32 %v1065_v51, 255.0 }
 0x21f   : > { %v1076_v54 = vmin.f32 %v1074_v52, 255.0 }
 0x220   : > { %v1069_v55 = vmul.f32 0.003921569, %v1067_v53 }
 0x221   : > { %v1078_v56 = vmul.f32 0.003921569, %v1076_v54 }
 0x222   : > { %1072 = vst.msk [vmem:[%s1579_s12 + $0x8] sm:$0xff] %vm1070_vm1, %v1069_v55 }
 0x223   : > { %1232 = vst.msk [vmem:[%s1579_s12 + $0x18] sm:$0xff] %vm1070_vm1, %v1078_v56 }
 0x224   : > { %1325 = shalt.err (!%p1322_p5)
}
 0x225   : > { %s1378_s10 = smov 128   ;;  %s1379_s12 = smov 8  }
 0x226   : > { %1241 = dma.vmem_to_hbm [thread:$0]  (%p1450_p4), %s1107_s21, 768, %s1109_s17, %s1092_s24, %s1378_s10, %s1378_s10, %s1379_s12  }
 0x227 PF: > { %p1247_p6 = scmp.ge.s32.totalorder %s1376_s23, 2  ;;  %s1123_s13 = sand.u32 1, %s1356_s18  }
 0x228   : > { %s1124_s14 = scalar_lea.sflag [#allocation3], %s1123_s13 }
 0x229   : > { %p1244_p7 = pnand %p1247_p6, %p1457_p8 }
 0x22b   : > { %p1245_p9 = pneg %p1244_p7 }
 0x22d   : > { %1351 = dma.done.wait (%p1245_p9), %s1124_s14, 768  }
 0x22e   : > { %1353 = vsyncadd (%p1245_p9), %s1124_s14, 4294966528  ;;  %s18_s23 = sadd.s32 1, %s1376_s23   ;;  %s1649_s18 = smov %s1360_s19 }
 0x22f   : > { %p15_p10 = scmp.ge.s32.totalorder %s18_s23, 4   ;;  %s1650_s19 = smov %s1364_s20 }
 0x230   : > { %s1651_s20 = smov %s1463_s6  ;;  %s1652_s21 = smov %s1372_s22 }
 0x231   : > { %s1653_s22 = smov %s1655_s26  ;;  %17 = sbr.rel (!%p15_p10) target bundleno = 4 (0x4), region = 83 }
 0x236   :  { %1130 = vsyncpa [#allocation3], 1 }
 0x237   :  { %1132 = vsyncpa [#allocation3 + $0x1], 1 }

</bundles_post_ra>
